<compile_context>
chip_gen: v6e
topology: v6e:2x2x1
jax: 0.10.0
libtpu: 0.0.40
codegen_flags: <defaults>
</compile_context>

<pallas_src>
import functools

import jax
import jax.numpy as jnp
import numpy as np
from jax.experimental import pallas as pl
from jax.experimental.pallas import tpu as pltpu


def _round_up(x, m):
    return (x + m - 1) // m * m


def _convlstm_step_kernel(xg_ref, wht_ref, mask_ref, h0_ref, c0_ref,
                          hseq_ref, c_out_ref,
                          h_ref, c_ref, col_ref,
                          *, H, W, Ch, kh, kw):
    """One (batch b, time t) grid step of the ConvLSTM recurrence.

    Layouts (channels on sublanes, flattened spatial H*W on lanes):
      xg_ref   (1, 1, 4Ch, HW)  precomputed Wx*x_t + bias (input-path gates)
      wht_ref  (4Ch, Kpad)      hidden->gate weights, taps packed into K
      mask_ref (kh*kw, HW)      0/1 validity mask per tap (SAME zero padding)
      h0/c0    (1, Ch, HW)      initial state
      hseq_ref (1, 1, Ch, HW)   h output (resident block if not return_all)
      c_out    (1, Ch, HW)      final c (resident across t)
      h_ref    (Ch, HW)         VMEM scratch: h carry
      c_ref    (Ch, HW)         VMEM scratch: c carry
      col_ref  (Kpad, HW)       VMEM scratch: packed im2col of h
    """
    t = pl.program_id(1)
    HW = H * W
    ph, pw = kh // 2, kw // 2

    @pl.when(t == 0)
    def _init():
        # Zero once per batch element so the K-padding rows ([kh*kw*Ch, Kpad))
        # contribute exactly zero to the matmul (never written afterwards).
        col_ref[...] = jnp.zeros_like(col_ref)
        h_ref[...] = h0_ref[0]
        c_ref[...] = c0_ref[0]

    h = h_ref[...]                                        # (Ch, HW)

    # Packed im2col of h: tap k=(di,dj) -> sublane rows [k*Ch, (k+1)*Ch).
    # Spatial shift s on the flat lane axis via XLU roll, out-of-image lanes
    # zeroed with the precomputed mask.  All stores are sublane-aligned.
    for k in range(kh * kw):
        di, dj = divmod(k, kw)
        s = (di - ph) * W + (dj - pw)
        if s == 0:
            col_ref[k * Ch:(k + 1) * Ch, :] = h
        else:
            shifted = pltpu.roll(h, shift=(-s) % HW, axis=1)   # out[p] = h[p + s]
            col_ref[k * Ch:(k + 1) * Ch, :] = shifted * mask_ref[k:k + 1, :]

    # Hidden->gate conv as a single MXU matmul: (4Ch, Kpad) @ (Kpad, HW).
    acc = jnp.dot(wht_ref[...], col_ref[...], preferred_element_type=jnp.float32)
    acc = acc + xg_ref[0, 0]                              # x-gates (+ bias)

    i_g = jax.nn.sigmoid(acc[0 * Ch:1 * Ch, :])
    f_g = jax.nn.sigmoid(acc[1 * Ch:2 * Ch, :])
    o_g = jax.nn.sigmoid(acc[2 * Ch:3 * Ch, :])
    g_g = jnp.tanh(acc[3 * Ch:4 * Ch, :])

    c_next = f_g * c_ref[...] + i_g * g_g
    h_next = o_g * jnp.tanh(c_next)

    c_ref[...] = c_next
    h_ref[...] = h_next
    hseq_ref[0, 0] = h_next
    c_out_ref[0] = c_next


def convlstm2d_forward(x_btchw, weight, bias, *, hidden_dim, kernel_size,
                       return_all_layers=False, initial_state=None):
    """ConvLSTM2DLayer.forward (hidden_state defaults to zeros, like the module)."""
    B, T, Cin, H, W = x_btchw.shape
    Ch = hidden_dim
    kh, kw = kernel_size
    assert kh % 2 == 1 and kw % 2 == 1, "module uses padding=k//2 (odd kernels)"
    HW = H * W
    G = 4 * Ch
    Kh = kh * kw * Ch
    Kpad = _round_up(Kh, 128)
    ph, pw = kh // 2, kw // 2

    # --- parameter packing (plain JAX glue) -------------------------------------
    w = weight.astype(jnp.float32)                                  # (G, Cin+Ch, kh, kw)
    wx_hwio = jnp.transpose(w[:, :Cin], (2, 3, 1, 0))               # (kh, kw, Cin, G)
    wht = jnp.transpose(w[:, Cin:], (0, 2, 3, 1)).reshape(G, Kh)    # taps packed into K
    wht = jnp.pad(wht, ((0, 0), (0, Kpad - Kh)))

    # --- hoist the x-conv out of the recurrence (parallel over all B*T) ---------
    x_nhwc = jnp.transpose(x_btchw.reshape(B * T, Cin, H, W),
                           (0, 2, 3, 1)).astype(jnp.float32)
    xg = jax.lax.conv_general_dilated(
        x_nhwc, wx_hwio, window_strides=(1, 1), padding="SAME",
        dimension_numbers=("NHWC", "HWIO", "NHWC")) + bias.astype(jnp.float32)
    xg = jnp.transpose(xg, (0, 3, 1, 2)).reshape(B, T, G, HW)       # (B, T, 4Ch, HW)

    # --- per-tap validity masks for SAME zero padding (tiny, host-side) ---------
    yy, xx = np.mgrid[0:H, 0:W]
    masks = np.zeros((kh * kw, HW), np.float32)
    for k in range(kh * kw):
        di, dj = divmod(k, kw)
        sy, sx = di - ph, dj - pw
        valid = ((yy + sy >= 0) & (yy + sy < H) & (xx + sx >= 0) & (xx + sx < W))
        masks[k] = valid.reshape(HW).astype(np.float32)
    masks = jnp.asarray(masks)

    if initial_state is None:
        h0 = jnp.zeros((B, Ch, HW), jnp.float32)
        c0 = jnp.zeros((B, Ch, HW), jnp.float32)
    else:
        h0_t, c0_t = initial_state                       # torch layout (B, Ch, H, W)
        h0 = jnp.reshape(h0_t, (B, Ch, HW)).astype(jnp.float32)
        c0 = jnp.reshape(c0_t, (B, Ch, HW)).astype(jnp.float32)

    T_out = T if return_all_layers else 1
    hseq_map = ((lambda b, t: (b, t, 0, 0)) if return_all_layers
                else (lambda b, t: (b, 0, 0, 0)))

    kernel = functools.partial(_convlstm_step_kernel,
                               H=H, W=W, Ch=Ch, kh=kh, kw=kw)

    hseq, c_last = pl.pallas_call(
        kernel,
        out_shape=(
            jax.ShapeDtypeStruct((B, T_out, Ch, HW), jnp.float32),
            jax.ShapeDtypeStruct((B, Ch, HW), jnp.float32),
        ),
        grid_spec=pltpu.PrefetchScalarGridSpec(
            num_scalar_prefetch=0,
            grid=(B, T),
            in_specs=[
                pl.BlockSpec((1, 1, G, HW), lambda b, t: (b, t, 0, 0)),   # x-gates
                pl.BlockSpec((G, Kpad), lambda b, t: (0, 0)),             # packed Wh^T
                pl.BlockSpec((kh * kw, HW), lambda b, t: (0, 0)),         # tap masks
                pl.BlockSpec((1, Ch, HW), lambda b, t: (b, 0, 0)),        # h0
                pl.BlockSpec((1, Ch, HW), lambda b, t: (b, 0, 0)),        # c0
            ],
            out_specs=(
                pl.BlockSpec((1, 1, Ch, HW), hseq_map),                   # h sequence / last
                pl.BlockSpec((1, Ch, HW), lambda b, t: (b, 0, 0)),        # final c
            ),
            scratch_shapes=[
                pltpu.VMEM((Ch, HW), jnp.float32),                        # h carry
                pltpu.VMEM((Ch, HW), jnp.float32),                        # c carry
                pltpu.VMEM((Kpad, HW), jnp.float32),                      # packed im2col
            ],
        ),
        compiler_params=pltpu.CompilerParams(
            dimension_semantics=("parallel", "arbitrary")),
    )(xg, wht, masks, h0, c0)

    # --- back to PyTorch layout (pure reshapes: layout is already NCHW-flat) ----
    layer_output = hseq.reshape(B, T_out, Ch, H, W)
    h_last = layer_output[:, -1]
    c_last = c_last.reshape(B, Ch, H, W)
    return layer_output, (h_last, c_last)


def reference_forward(x_btchw, weight, bias, *, hidden_dim, kernel_size,
                      return_all_layers=False):
    """Plain-JAX reference matching the PyTorch module semantics."""
    B, T, Cin, H, W = x_btchw.shape
    Ch = hidden_dim
    w_hwio = jnp.transpose(weight, (2, 3, 1, 0)).astype(jnp.float32)
    h = jnp.zeros((B, H, W, Ch), jnp.float32)
    c = jnp.zeros((B, H, W, Ch), jnp.float32)
    outs = []
    for t in range(T):
        x_t = jnp.transpose(x_btchw[:, t], (0, 2, 3, 1)).astype(jnp.float32)
        comb = jnp.concatenate([x_t, h], axis=-1)
        conv = jax.lax.conv_general_dilated(
            comb, w_hwio, window_strides=(1, 1), padding="SAME",
            dimension_numbers=("NHWC", "HWIO", "NHWC")) + bias.astype(jnp.float32)
        cc_i, cc_f, cc_o, cc_g = jnp.split(conv, 4, axis=-1)
        i = jax.nn.sigmoid(cc_i)
        f = jax.nn.sigmoid(cc_f)
        o = jax.nn.sigmoid(cc_o)
        g = jnp.tanh(cc_g)
        c = f * c + i * g
        h = o * jnp.tanh(c)
        outs.append(h)
    h_all_nchw = jnp.stack(
        [jnp.transpose(o_, (0, 3, 1, 2)) for o_ in outs], axis=1)
    h_last = h_all_nchw[:, -1]
    c_last = jnp.transpose(c, (0, 3, 1, 2))
    layer_output = h_all_nchw if return_all_layers else h_last[:, None]
    return layer_output, (h_last, c_last)


if __name__ == "__main__":
    # Small shapes consistent with the module's forward: input (B, T, Cin, H, W).
    B, T, Cin, H, W = 2, 8, 4, 16, 16
    hidden_dim = 32
    kernel_size = (3, 3)
    Cc = Cin + hidden_dim

    key = jax.random.PRNGKey(0)
    kx, kw_, kb = jax.random.split(key, 3)
    x = jax.random.normal(kx, (B, T, Cin, H, W), dtype=jnp.float32)

    # Deterministic synthetic Conv2d parameters (PyTorch-style fan_in scaling).
    fan_in = Cc * kernel_size[0] * kernel_size[1]
    bound = 1.0 / np.sqrt(fan_in)
    weight = jax.random.uniform(
        kw_, (4 * hidden_dim, Cc, kernel_size[0], kernel_size[1]),
        minval=-bound, maxval=bound, dtype=jnp.float32)
    bias = jax.random.uniform(
        kb, (4 * hidden_dim,), minval=-bound, maxval=bound, dtype=jnp.float32)

    # Default path (return_all_layers=False).
    out, (h_last, c_last) = convlstm2d_forward(
        x, weight, bias, hidden_dim=hidden_dim, kernel_size=kernel_size)
    jax.block_until_ready((out, h_last, c_last))

    ref_out, (ref_h, ref_c) = reference_forward(
        x, weight, bias, hidden_dim=hidden_dim, kernel_size=kernel_size)

    assert out.shape == (B, 1, hidden_dim, H, W)
    assert h_last.shape == (B, hidden_dim, H, W)
    assert c_last.shape == (B, hidden_dim, H, W)
    np.testing.assert_allclose(np.asarray(out), np.asarray(ref_out),
                               rtol=1e-4, atol=1e-4)
    np.testing.assert_allclose(np.asarray(h_last), np.asarray(ref_h),
                               rtol=1e-4, atol=1e-4)
    np.testing.assert_allclose(np.asarray(c_last), np.asarray(ref_c),
                               rtol=1e-4, atol=1e-4)

    # return_all_layers=True path (full sequence written back).
    out_all, (h_last2, c_last2) = convlstm2d_forward(
        x, weight, bias, hidden_dim=hidden_dim, kernel_size=kernel_size,
        return_all_layers=True)
    jax.block_until_ready((out_all, h_last2, c_last2))
    ref_all, (ref_h2, ref_c2) = reference_forward(
        x, weight, bias, hidden_dim=hidden_dim, kernel_size=kernel_size,
        return_all_layers=True)
    assert out_all.shape == (B, T, hidden_dim, H, W)
    np.testing.assert_allclose(np.asarray(out_all), np.asarray(ref_all),
                               rtol=1e-4, atol=1e-4)
    np.testing.assert_allclose(np.asarray(h_last2), np.asarray(ref_h2),
                               rtol=1e-4, atol=1e-4)
    np.testing.assert_allclose(np.asarray(c_last2), np.asarray(ref_c2),
                               rtol=1e-4, atol=1e-4)

    print("KERNEL_OK")
</pallas_src>

<mosaic_0001>
module attributes {stable_mosaic.version = 11 : i64} {
  func.func @_convlstm_step_kernel(%arg0: i32, %arg1: i32, %arg2: memref<1x1x128x256xf32, #tpu.memory_space<vmem>>, %arg3: memref<128x384xf32, #tpu.memory_space<vmem>>, %arg4: memref<9x256xf32, #tpu.memory_space<vmem>>, %arg5: memref<1x32x256xf32, #tpu.memory_space<vmem>>, %arg6: memref<1x32x256xf32, #tpu.memory_space<vmem>>, %arg7: memref<1x1x32x256xf32, #tpu.memory_space<vmem>>, %arg8: memref<1x32x256xf32, #tpu.memory_space<vmem>>, %arg9: memref<32x256xf32, #tpu.memory_space<vmem>>, %arg10: memref<32x256xf32, #tpu.memory_space<vmem>>, %arg11: memref<384x256xf32, #tpu.memory_space<vmem>>) attributes {dimension_semantics = [#tpu.dimension_semantics<parallel>, #tpu.dimension_semantics<arbitrary>], iteration_bounds = array<i64: 2, 8>, scalar_prefetch = 0 : i64, scratch_operands = 3 : i64, tpu.core_type = #tpu.core_type<tc>, window_params = [{transform_indices = @transform_0, window_bounds = array<i64: 1, 1, 128, 256>}, {pipeline_mode = #tpu.pipeline_mode<synchronous>, transform_indices = @transform_1, window_bounds = array<i64: 128, 384>}, {pipeline_mode = #tpu.pipeline_mode<synchronous>, transform_indices = @transform_2, window_bounds = array<i64: 9, 256>}, {transform_indices = @transform_3, window_bounds = array<i64: 1, 32, 256>}, {transform_indices = @transform_4, window_bounds = array<i64: 1, 32, 256>}, {transform_indices = @transform_5, window_bounds = array<i64: 1, 1, 32, 256>}, {transform_indices = @transform_6, window_bounds = array<i64: 1, 32, 256>}]} {
    %c0_i32 = arith.constant 0 : i32
    %0 = arith.cmpi eq, %arg1, %c0_i32 : i32
    %1 = arith.extui %0 : i1 to i32
    %c0_i32_0 = arith.constant 0 : i32
    %2 = arith.cmpi ne, %1, %c0_i32_0 : i32
    scf.if %2 {
      %cst_45 = arith.constant 0.000000e+00 : f32
      %85 = vector.broadcast %cst_45 : f32 to vector<384x256xf32>
      %c0_46 = arith.constant 0 : index
      %c0_47 = arith.constant 0 : index
      %86 = vector.load %arg11[%c0_46, %c0_47] : memref<384x256xf32, #tpu.memory_space<vmem>>, vector<384x256xf32>
      tpu.vector_store %arg11[%c0_46, %c0_47], %85 {strides = array<i32>} : memref<384x256xf32, #tpu.memory_space<vmem>>, vector<384x256xf32>,
      %c0_48 = arith.constant 0 : index
      %c0_49 = arith.constant 0 : index
      %c0_50 = arith.constant 0 : index
      %87 = vector.load %arg5[%c0_48, %c0_49, %c0_50] : memref<1x32x256xf32, #tpu.memory_space<vmem>>, vector<1x32x256xf32>
      %88 = vector.shape_cast %87 : vector<1x32x256xf32> to vector<32x256xf32>
      %c0_51 = arith.constant 0 : index
      %c0_52 = arith.constant 0 : index
      %89 = vector.load %arg9[%c0_51, %c0_52] : memref<32x256xf32, #tpu.memory_space<vmem>>, vector<32x256xf32>
      tpu.vector_store %arg9[%c0_51, %c0_52], %88 {strides = array<i32>} : memref<32x256xf32, #tpu.memory_space<vmem>>, vector<32x256xf32>,
      %c0_53 = arith.constant 0 : index
      %c0_54 = arith.constant 0 : index
      %c0_55 = arith.constant 0 : index
      %90 = vector.load %arg6[%c0_53, %c0_54, %c0_55] : memref<1x32x256xf32, #tpu.memory_space<vmem>>, vector<1x32x256xf32>
      %91 = vector.shape_cast %90 : vector<1x32x256xf32> to vector<32x256xf32>
      %c0_56 = arith.constant 0 : index
      %c0_57 = arith.constant 0 : index
      %92 = vector.load %arg10[%c0_56, %c0_57] : memref<32x256xf32, #tpu.memory_space<vmem>>, vector<32x256xf32>
      tpu.vector_store %arg10[%c0_56, %c0_57], %91 {strides = array<i32>} : memref<32x256xf32, #tpu.memory_space<vmem>>, vector<32x256xf32>,
    } else {
    }
    %c0 = arith.constant 0 : index
    %c0_1 = arith.constant 0 : index
    %3 = vector.load %arg9[%c0, %c0_1] : memref<32x256xf32, #tpu.memory_space<vmem>>, vector<32x256xf32>
    %c17_i32 = arith.constant 17 : i32
    %4 = tpu.dynamic_rotate %3 by %c17_i32 dim 1 : vector<32x256xf32>, i32 -> vector<32x256xf32>
    %c0_2 = arith.constant 0 : index
    %c0_3 = arith.constant 0 : index
    %5 = vector.load %arg4[%c0_2, %c0_3] : memref<9x256xf32, #tpu.memory_space<vmem>>, vector<1x256xf32>
    %6 = vector.broadcast %5 : vector<1x256xf32> to vector<32x256xf32>
    %7 = arith.mulf %4, %6 : vector<32x256xf32>
    %c0_4 = arith.constant 0 : index
    %c0_5 = arith.constant 0 : index
    %8 = vector.load %arg11[%c0_4, %c0_5] : memref<384x256xf32, #tpu.memory_space<vmem>>, vector<32x256xf32>
    tpu.vector_store %arg11[%c0_4, %c0_5], %7 {strides = array<i32>} : memref<384x256xf32, #tpu.memory_space<vmem>>, vector<32x256xf32>,
    %c16_i32 = arith.constant 16 : i32
    %9 = tpu.dynamic_rotate %3 by %c16_i32 dim 1 : vector<32x256xf32>, i32 -> vector<32x256xf32>
    %c1 = arith.constant 1 : index
    %c0_6 = arith.constant 0 : index
    %10 = vector.load %arg4[%c1, %c0_6] : memref<9x256xf32, #tpu.memory_space<vmem>>, vector<1x256xf32>
    %11 = vector.broadcast %10 : vector<1x256xf32> to vector<32x256xf32>
    %12 = arith.mulf %9, %11 : vector<32x256xf32>
    %c32 = arith.constant 32 : index
    %c0_7 = arith.constant 0 : index
    %13 = vector.load %arg11[%c32, %c0_7] : memref<384x256xf32, #tpu.memory_space<vmem>>, vector<32x256xf32>
    tpu.vector_store %arg11[%c32, %c0_7], %12 {strides = array<i32>} : memref<384x256xf32, #tpu.memory_space<vmem>>, vector<32x256xf32>,
    %c15_i32 = arith.constant 15 : i32
    %14 = tpu.dynamic_rotate %3 by %c15_i32 dim 1 : vector<32x256xf32>, i32 -> vector<32x256xf32>
    %c2 = arith.constant 2 : index
    %c0_8 = arith.constant 0 : index
    %15 = vector.load %arg4[%c2, %c0_8] : memref<9x256xf32, #tpu.memory_space<vmem>>, vector<1x256xf32>
    %16 = vector.broadcast %15 : vector<1x256xf32> to vector<32x256xf32>
    %17 = arith.mulf %14, %16 : vector<32x256xf32>
    %c64 = arith.constant 64 : index
    %c0_9 = arith.constant 0 : index
    %18 = vector.load %arg11[%c64, %c0_9] : memref<384x256xf32, #tpu.memory_space<vmem>>, vector<32x256xf32>
    tpu.vector_store %arg11[%c64, %c0_9], %17 {strides = array<i32>} : memref<384x256xf32, #tpu.memory_space<vmem>>, vector<32x256xf32>,
    %c1_i32 = arith.constant 1 : i32
    %19 = tpu.dynamic_rotate %3 by %c1_i32 dim 1 : vector<32x256xf32>, i32 -> vector<32x256xf32>
    %c3 = arith.constant 3 : index
    %c0_10 = arith.constant 0 : index
    %20 = vector.load %arg4[%c3, %c0_10] : memref<9x256xf32, #tpu.memory_space<vmem>>, vector<1x256xf32>
    %21 = vector.broadcast %20 : vector<1x256xf32> to vector<32x256xf32>
    %22 = arith.mulf %19, %21 : vector<32x256xf32>
    %c96 = arith.constant 96 : index
    %c0_11 = arith.constant 0 : index
    %23 = vector.load %arg11[%c96, %c0_11] : memref<384x256xf32, #tpu.memory_space<vmem>>, vector<32x256xf32>
    tpu.vector_store %arg11[%c96, %c0_11], %22 {strides = array<i32>} : memref<384x256xf32, #tpu.memory_space<vmem>>, vector<32x256xf32>,
    %c128 = arith.constant 128 : index
    %c0_12 = arith.constant 0 : index
    %24 = vector.load %arg11[%c128, %c0_12] : memref<384x256xf32, #tpu.memory_space<vmem>>, vector<32x256xf32>
    tpu.vector_store %arg11[%c128, %c0_12], %3 {strides = array<i32>} : memref<384x256xf32, #tpu.memory_space<vmem>>, vector<32x256xf32>,
    %c255_i32 = arith.constant 255 : i32
    %25 = tpu.dynamic_rotate %3 by %c255_i32 dim 1 : vector<32x256xf32>, i32 -> vector<32x256xf32>
    %c5 = arith.constant 5 : index
    %c0_13 = arith.constant 0 : index
    %26 = vector.load %arg4[%c5, %c0_13] : memref<9x256xf32, #tpu.memory_space<vmem>>, vector<1x256xf32>
    %27 = vector.broadcast %26 : vector<1x256xf32> to vector<32x256xf32>
    %28 = arith.mulf %25, %27 : vector<32x256xf32>
    %c160 = arith.constant 160 : index
    %c0_14 = arith.constant 0 : index
    %29 = vector.load %arg11[%c160, %c0_14] : memref<384x256xf32, #tpu.memory_space<vmem>>, vector<32x256xf32>
    tpu.vector_store %arg11[%c160, %c0_14], %28 {strides = array<i32>} : memref<384x256xf32, #tpu.memory_space<vmem>>, vector<32x256xf32>,
    %c241_i32 = arith.constant 241 : i32
    %30 = tpu.dynamic_rotate %3 by %c241_i32 dim 1 : vector<32x256xf32>, i32 -> vector<32x256xf32>
    %c6 = arith.constant 6 : index
    %c0_15 = arith.constant 0 : index
    %31 = vector.load %arg4[%c6, %c0_15] : memref<9x256xf32, #tpu.memory_space<vmem>>, vector<1x256xf32>
    %32 = vector.broadcast %31 : vector<1x256xf32> to vector<32x256xf32>
    %33 = arith.mulf %30, %32 : vector<32x256xf32>
    %c192 = arith.constant 192 : index
    %c0_16 = arith.constant 0 : index
    %34 = vector.load %arg11[%c192, %c0_16] : memref<384x256xf32, #tpu.memory_space<vmem>>, vector<32x256xf32>
    tpu.vector_store %arg11[%c192, %c0_16], %33 {strides = array<i32>} : memref<384x256xf32, #tpu.memory_space<vmem>>, vector<32x256xf32>,
    %c240_i32 = arith.constant 240 : i32
    %35 = tpu.dynamic_rotate %3 by %c240_i32 dim 1 : vector<32x256xf32>, i32 -> vector<32x256xf32>
    %c7 = arith.constant 7 : index
    %c0_17 = arith.constant 0 : index
    %36 = vector.load %arg4[%c7, %c0_17] : memref<9x256xf32, #tpu.memory_space<vmem>>, vector<1x256xf32>
    %37 = vector.broadcast %36 : vector<1x256xf32> to vector<32x256xf32>
    %38 = arith.mulf %35, %37 : vector<32x256xf32>
    %c224 = arith.constant 224 : index
    %c0_18 = arith.constant 0 : index
    %39 = vector.load %arg11[%c224, %c0_18] : memref<384x256xf32, #tpu.memory_space<vmem>>, vector<32x256xf32>
    tpu.vector_store %arg11[%c224, %c0_18], %38 {strides = array<i32>} : memref<384x256xf32, #tpu.memory_space<vmem>>, vector<32x256xf32>,
    %c239_i32 = arith.constant 239 : i32
    %40 = tpu.dynamic_rotate %3 by %c239_i32 dim 1 : vector<32x256xf32>, i32 -> vector<32x256xf32>
    %c8 = arith.constant 8 : index
    %c0_19 = arith.constant 0 : index
    %41 = vector.load %arg4[%c8, %c0_19] : memref<9x256xf32, #tpu.memory_space<vmem>>, vector<1x256xf32>
    %42 = vector.broadcast %41 : vector<1x256xf32> to vector<32x256xf32>
    %43 = arith.mulf %40, %42 : vector<32x256xf32>
    %c256 = arith.constant 256 : index
    %c0_20 = arith.constant 0 : index
    %44 = vector.load %arg11[%c256, %c0_20] : memref<384x256xf32, #tpu.memory_space<vmem>>, vector<32x256xf32>
    tpu.vector_store %arg11[%c256, %c0_20], %43 {strides = array<i32>} : memref<384x256xf32, #tpu.memory_space<vmem>>, vector<32x256xf32>,
    %c0_21 = arith.constant 0 : index
    %c0_22 = arith.constant 0 : index
    %45 = vector.load %arg3[%c0_21, %c0_22] : memref<128x384xf32, #tpu.memory_space<vmem>>, vector<128x384xf32>
    %c0_23 = arith.constant 0 : index
    %c0_24 = arith.constant 0 : index
    %46 = vector.load %arg11[%c0_23, %c0_24] : memref<384x256xf32, #tpu.memory_space<vmem>>, vector<384x256xf32>
    %cst = arith.constant dense<0.000000e+00> : vector<128x256xf32>
    %47 = tpu.matmul %45, %46, %cst {dimension_numbers = #tpu.dot_dimension_numbers<[1], [0], [0], [1], [0, 0, 1, 1], [], []>} : vector<128x384xf32>, vector<384x256xf32>, vector<128x256xf32> -> vector<128x256xf32>
    %c0_25 = arith.constant 0 : index
    %c0_26 = arith.constant 0 : index
    %c0_27 = arith.constant 0 : index
    %c0_28 = arith.constant 0 : index
    %48 = vector.load %arg2[%c0_25, %c0_26, %c0_27, %c0_28] : memref<1x1x128x256xf32, #tpu.memory_space<vmem>>, vector<1x1x128x256xf32>
    %49 = vector.shape_cast %48 : vector<1x1x128x256xf32> to vector<128x256xf32>
    %50 = arith.addf %47, %49 : vector<128x256xf32>
    %51 = vector.extract_strided_slice %50 {offsets = [0, 0], sizes = [32, 256], strides = [1, 1]} : vector<128x256xf32> to vector<32x256xf32>
    %52 = arith.negf %51 : vector<32x256xf32>
    %53 = math.exp %52 : vector<32x256xf32>
    %cst_29 = arith.constant 1.000000e+00 : f32
    %54 = vector.broadcast %cst_29 : f32 to vector<32x256xf32>
    %55 = arith.addf %54, %53 : vector<32x256xf32>
    %56 = arith.divf %54, %55 : vector<32x256xf32>
    %57 = vector.extract_strided_slice %50 {offsets = [32, 0], sizes = [32, 256], strides = [1, 1]} : vector<128x256xf32> to vector<32x256xf32>
    %58 = arith.negf %57 : vector<32x256xf32>
    %59 = math.exp %58 : vector<32x256xf32>
    %cst_30 = arith.constant 1.000000e+00 : f32
    %60 = vector.broadcast %cst_30 : f32 to vector<32x256xf32>
    %61 = arith.addf %60, %59 : vector<32x256xf32>
    %62 = arith.divf %60, %61 : vector<32x256xf32>
    %63 = vector.extract_strided_slice %50 {offsets = [64, 0], sizes = [32, 256], strides = [1, 1]} : vector<128x256xf32> to vector<32x256xf32>
    %64 = arith.negf %63 : vector<32x256xf32>
    %65 = math.exp %64 : vector<32x256xf32>
    %cst_31 = arith.constant 1.000000e+00 : f32
    %66 = vector.broadcast %cst_31 : f32 to vector<32x256xf32>
    %67 = arith.addf %66, %65 : vector<32x256xf32>
    %68 = arith.divf %66, %67 : vector<32x256xf32>
    %69 = vector.extract_strided_slice %50 {offsets = [96, 0], sizes = [32, 256], strides = [1, 1]} : vector<128x256xf32> to vector<32x256xf32>
    %70 = math.tanh %69 : vector<32x256xf32>
    %c0_32 = arith.constant 0 : index
    %c0_33 = arith.constant 0 : index
    %71 = vector.load %arg10[%c0_32, %c0_33] : memref<32x256xf32, #tpu.memory_space<vmem>>, vector<32x256xf32>
    %72 = arith.mulf %62, %71 : vector<32x256xf32>
    %73 = arith.mulf %56, %70 : vector<32x256xf32>
    %74 = arith.addf %72, %73 : vector<32x256xf32>
    %75 = math.tanh %74 : vector<32x256xf32>
    %76 = arith.mulf %68, %75 : vector<32x256xf32>
    %c0_34 = arith.constant 0 : index
    %c0_35 = arith.constant 0 : index
    %77 = vector.load %arg10[%c0_34, %c0_35] : memref<32x256xf32, #tpu.memory_space<vmem>>, vector<32x256xf32>
    tpu.vector_store %arg10[%c0_34, %c0_35], %74 {strides = array<i32>} : memref<32x256xf32, #tpu.memory_space<vmem>>, vector<32x256xf32>,
    %c0_36 = arith.constant 0 : index
    %c0_37 = arith.constant 0 : index
    %78 = vector.load %arg9[%c0_36, %c0_37] : memref<32x256xf32, #tpu.memory_space<vmem>>, vector<32x256xf32>
    tpu.vector_store %arg9[%c0_36, %c0_37], %76 {strides = array<i32>} : memref<32x256xf32, #tpu.memory_space<vmem>>, vector<32x256xf32>,
    %c0_38 = arith.constant 0 : index
    %c0_39 = arith.constant 0 : index
    %c0_40 = arith.constant 0 : index
    %c0_41 = arith.constant 0 : index
    %79 = vector.load %arg7[%c0_38, %c0_39, %c0_40, %c0_41] : memref<1x1x32x256xf32, #tpu.memory_space<vmem>>, vector<1x1x32x256xf32>
    %80 = vector.shape_cast %79 : vector<1x1x32x256xf32> to vector<32x256xf32>
    %81 = vector.shape_cast %76 : vector<32x256xf32> to vector<1x1x32x256xf32>
    tpu.vector_store %arg7[%c0_38, %c0_39, %c0_40, %c0_41], %81 {strides = array<i32>} : memref<1x1x32x256xf32, #tpu.memory_space<vmem>>, vector<1x1x32x256xf32>,
    %c0_42 = arith.constant 0 : index
    %c0_43 = arith.constant 0 : index
    %c0_44 = arith.constant 0 : index
    %82 = vector.load %arg8[%c0_42, %c0_43, %c0_44] : memref<1x32x256xf32, #tpu.memory_space<vmem>>, vector<1x32x256xf32>
    %83 = vector.shape_cast %82 : vector<1x32x256xf32> to vector<32x256xf32>
    %84 = vector.shape_cast %74 : vector<32x256xf32> to vector<1x32x256xf32>
    tpu.vector_store %arg8[%c0_42, %c0_43, %c0_44], %84 {strides = array<i32>} : memref<1x32x256xf32, #tpu.memory_space<vmem>>, vector<1x32x256xf32>,
    return
  }
  func.func @transform_0(%arg0: i32, %arg1: i32) -> (i32, i32, i32, i32) {
    %c0_i32 = arith.constant 0 : i32
    %c0_i32_0 = arith.constant 0 : i32
    %c0_i32_1 = arith.constant 0 : i32
    return %arg0, %arg1, %c0_i32, %c0_i32_0 : i32, i32, i32, i32
  }
  func.func @transform_1(%arg0: i32, %arg1: i32) -> (i32, i32) {
    %c0_i32 = arith.constant 0 : i32
    %c0_i32_0 = arith.constant 0 : i32
    %c0_i32_1 = arith.constant 0 : i32
    return %c0_i32, %c0_i32_0 : i32, i32
  }
  func.func @transform_2(%arg0: i32, %arg1: i32) -> (i32, i32) {
    %c0_i32 = arith.constant 0 : i32
    %c0_i32_0 = arith.constant 0 : i32
    %c0_i32_1 = arith.constant 0 : i32
    return %c0_i32, %c0_i32_0 : i32, i32
  }
  func.func @transform_3(%arg0: i32, %arg1: i32) -> (i32, i32, i32) {
    %c0_i32 = arith.constant 0 : i32
    %c0_i32_0 = arith.constant 0 : i32
    %c0_i32_1 = arith.constant 0 : i32
    return %arg0, %c0_i32, %c0_i32_0 : i32, i32, i32
  }
  func.func @transform_4(%arg0: i32, %arg1: i32) -> (i32, i32, i32) {
    %c0_i32 = arith.constant 0 : i32
    %c0_i32_0 = arith.constant 0 : i32
    %c0_i32_1 = arith.constant 0 : i32
    return %arg0, %c0_i32, %c0_i32_0 : i32, i32, i32
  }
  func.func @transform_5(%arg0: i32, %arg1: i32) -> (i32, i32, i32, i32) {
    %c0_i32 = arith.constant 0 : i32
    %c0_i32_0 = arith.constant 0 : i32
    %c0_i32_1 = arith.constant 0 : i32
    %c0_i32_2 = arith.constant 0 : i32
    return %arg0, %c0_i32, %c0_i32_0, %c0_i32_1 : i32, i32, i32, i32
  }
  func.func @transform_6(%arg0: i32, %arg1: i32) -> (i32, i32, i32) {
    %c0_i32 = arith.constant 0 : i32
    %c0_i32_0 = arith.constant 0 : i32
    %c0_i32_1 = arith.constant 0 : i32
    return %arg0, %c0_i32, %c0_i32_0 : i32, i32, i32
  }
}

</mosaic_0001>

<bundles_post_ra>
// kernel: tpu_custom_call.1
= control target key start
LH: loop header
LB: loop body
LE: loop exit
PB: predicated region body
PF: predicated region fallthrough
CT: control target
= control target key end

     0   :  { %s3363_s0 = inlined_call_operand.hbm [shape: f32[2,8,128,256], index: 0, kind: input, shape index: {}]   ;;  %s3364_s1 = inlined_call_operand.hbm [shape: f32[128,384], index: 1, kind: input, shape index: {}]   ;;  %s3365_s2 = inlined_call_operand.hbm [shape: f32[9,256], index: 2, kind: input, shape index: {}]   ;;  %s3366_s3 = inlined_call_operand.hbm [shape: f32[2,32,256], index: 3, kind: input, shape index: {}]   ;;  %s3367_s4 = inlined_call_operand.hbm [shape: f32[2,32,256], index: 4, kind: input, shape index: {}]   ;;  %s3368_s5 = inlined_call_operand.hbm [shape: f32[2,1,32,256], index: 5, kind: output, shape index: {0}]   ;;  %s3369_s6 = inlined_call_operand.hbm [shape: f32[2,32,256], index: 6, kind: output, shape index: {1}]  }
   0x1   :  { %3394 = sst [smem:[#allocation33_spill]] %s3364_s1 }
   0x2   :  { %3395 = sst [smem:[#allocation34_spill]] %s3365_s2 }
   0x3   :  { %3396 = sst [smem:[#allocation35_spill]] %s3366_s3 }
   0x4   :  { %3397 = sst [smem:[#allocation36_spill]] %s3367_s4 }
   0x5   :  { %3398 = sst [smem:[#allocation37_spill]] %s3368_s5 }
   0x6   :  { %3399 = sst [smem:[#allocation38_spill]] %s3369_s6 }
   0x7   :  { %12 = vsyncpa [#allocation6], 0 }
   0x8   :  { %14 = vsyncpa [#allocation6 + $0x1], 0 }
   0x9   :  { %15 = vsyncpa [#allocation9], 0 }
   0xa   :  { %16 = vsyncpa [#allocation12], 0 }
   0xb   :  { %18 = vsyncpa [#allocation12 + $0x1], 0 }
   0xc   :  { %19 = vsyncpa [#allocation7], 0 }
   0xd   :  { %21 = vsyncpa [#allocation7 + $0x1], 0 }
   0xe   :  { %22 = vsyncpa [#allocation16], 0 }
   0xf   :  { %24 = vsyncpa [#allocation16 + $0x1], 0  ;;  %s2625_s21 = smov 0   ;;  %s2627_s22 = smov 0  }
  0x10   :  { %s2629_s23 = smov 0   ;;  %s2631_s24 = smov 0  }
  0x11   :  { %s2633_s25 = smov 0   ;;  %s2635_s26 = smov 0  }
  0x12   :  { %s2637_s27 = smov 0   ;;  %s2639_s28 = smov 0  }
  0x13   :  { %s2641_s29 = smov 0   ;;  %s2643_s30 = smov 0  }
  0x14   :  { %s2645_s7 = smov 0  }
  0x15 LB: > { %3400 = sst [smem:[#allocation22_spill]] %s2526_s21  ;;  %s2679_s8 = sadd.s32 4294967295, %s2566_s7   ;;  %s2566_s7 = sphi %s2645_s7, %s30_s7   ;;  %s2562_s30 = sphi %s2643_s30, %s3455_s30   ;;  %s2558_s29 = sphi %s2641_s29, %s3448_s29   ;;  %s2554_s28 = sphi %s2639_s28, %s3454_s28   ;;  %s2550_s27 = sphi %s2637_s27, %s3447_s27   ;;  %s2546_s26 = sphi %s2635_s26, %s3453_s26   ;;  %s2542_s25 = sphi %s2633_s25, %s3452_s25   ;;  %s2538_s24 = sphi %s2631_s24, %s3451_s24   ;;  %s2534_s23 = sphi %s2629_s23, %s3450_s23   ;;  %s2530_s22 = sphi %s2627_s22, %s3449_s22   ;;  %s2526_s21 = sphi %s2625_s21, %s3445_s21  }
  0x16   : > { %3401 = sst [smem:[#allocation23_spill]] %s2530_s22  ;;  %s1931_s9 = sadd.s32 4294967294, %s2566_s7  }
  0x17   : > { %3402 = sst [smem:[#allocation24_spill]] %s2550_s27  ;;  %p64_p0 = scmp.ne.s32.totalorder %s2542_s25, %s2538_s24 }
  0x18   : > { %3403 = sst [smem:[#allocation25_spill]] %s2554_s28  ;;  %p3378_p1 = scmp.eq.s32.totalorder %s2679_s8, 0 }
  0x19   : > { %3404 = sst [smem:[#allocation26_spill]] %s2558_s29  ;;  %p132_p2 = scmp.ne.s32.totalorder %s2530_s22, %s2526_s21 }
  0x1a   : > { %3405 = sst [smem:[#allocation27_spill]] %s2679_s8  ;;  %p2688_p3 = por %p3378_p1, %p64_p0 }
  0x1b   : > { %p188_p4 = scmp.eq.s32.totalorder %s1931_s9, 15  ;;  %p2694_p5 = por %p132_p2, %p3378_p1 }
  0x1c   : > { %s3406_s10 = scalar_select %p2688_p3, 1, 0 }
  0x1d   : > { %s3408_s11 = scalar_select %p2694_p5, 1, 0 }
  0x1e   : > { %3407 = sst [smem:[#allocation28_spill]] %s3406_s10  ;;  %p1932_p6 = scmp.ge.s32.totalorder %s2566_s7, 1 }
  0x1f   : > { %3409 = sst [smem:[#allocation29_spill]] %s3408_s11  ;;  %p2699_p7 = por %p188_p4, %p132_p2 }
  0x20   : > { %p221_p8 = scmp.lt.s32.totalorder %s2566_s7, 17  ;;  %s2568_s14 = smov [#allocation8]  }
  0x21   : > { %s3410_s12 = scalar_select %p2699_p7, 1, 0 }
  0x22   : > { %p2704_p9 = pnand %p1932_p6, %p221_p8  ;;  %s233_s15 = sshll.u32 %s2568_s14, 4  ;;  %s234_s15 = int_to_ptr.vmem [resolvable:$true] %s233_s15 }
  0x23   : > { %3411 = sst [smem:[#allocation30_spill]] %s3410_s12  ;;  %p182_p12 = scmp.eq.s32.totalorder %s2679_s8, 15 }
  0x24   : > { %p2009_p10 = pneg %p2704_p9  ;;  %s2283_s17 = scalar_lea.vmem %s234_s15, 6144 }
  0x25   : > { %p2284_p0 = scmp.ne.s32.totalorder %s234_s15, %s2283_s17  ;;  %p2291_p6 = scmp.lt.s32.totalorder %s234_s15, %s234_s15 }
  0x26   : > { %p2712_p11 = pnand %p2009_p10, %p3378_p1  ;;  %p2292_p8 = scmp.lt.s32.totalorder %s2283_s17, %s2283_s17 }
  0x28   : > { %p2274_p13 = pneg %p2712_p11  ;;  %p2293_p7 = por %p2292_p8, %p2291_p6 }
  0x2a   : > { %p2286_p2 = pnand %p2284_p0, %p2274_p13 }
  0x2c   : > { %p2287_p4 = pneg %p2286_p2 }
  0x2e   : > { %p2294_p5 = pnand %p2293_p7, %p2287_p4 }
  0x30   : > { %2297 = shalt.err (!%p2294_p5)
}
  0x31   : > { %s2569_s18 = smov 384   ;;  %s2570_s19 = smov 24  }
  0x32   : > { %s3414_s1 = sld [smem:[#allocation33_spill]]  ;;  %p3380_p5 = scmp.eq.s32.totalorder %s2566_s7, 0 }
  0x33   : > { %p126_p7 = scmp.ne.s32.totalorder %s2534_s23, %s2530_s22  ;;  %p3379_p10 = scmp.lt.s32.totalorder %s2566_s7, 16 }
  0x34   : > { %s283_s17 = sand.u32 1, %s2566_s7   ;;  %s285_s12 = sand.u32 1, %s2534_s23  }
  0x35   : > { %p128_p0 = por %p126_p7, %p3380_p5  ;;  %p2736_p2 = por %p182_p12, %p126_p7 }
  0x36   : > { %s2742_s21 = sshll.u32 %s285_s12, 6  ;;  %s1987_s20 = sshll.u32 %s2562_s30, 10 }
  0x37   : > { %s3415_s14 = scalar_select %p2736_p2, 1, 0 }
  0x38   : > { %2012 = dma.hbm_to_vmem [thread:$0]  (!%p2712_p11), %s3414_s1, 6144, %s234_s15, [#allocation9], %s2569_s18, %s2569_s18, %s2570_s19  }
  0x39   : > { %3416 = sst [smem:[#allocation31_spill]] %s3415_s14  ;;  %s287_s19 = scalar_lea.vmem [#allocation11], %s2742_s21 }
  0x3a   : > { %s3417_s3 = sld [smem:[#allocation35_spill]]  ;;  %s294_s9 = sshll.u32 %s287_s19, 4  ;;  %s295_s9 = int_to_ptr.vmem [resolvable:$true] %s294_s9 }
  0x3b   : > { %p2751_p4 = pnand %p3379_p10, %p128_p0  ;;  %s3419_s4 = sld [smem:[#allocation36_spill]] }
  0x3c   : > { %s2761_s28 = scalar_lea.sflag [#allocation12], %s283_s17  ;;  %s2311_s24 = scalar_lea.vmem %s295_s9, 1024 }
  0x3d   : > { %p2300_p12 = pneg %p2751_p4  ;;  %p2312_p6 = scmp.ne.s32.totalorder %s295_s9, %s2311_s24 }
  0x3e   : > { %s2571_s15 = smov [#allocation11]  }
  0x3f   : > { %p2314_p8 = pnand %p2312_p6, %p2300_p12  ;;  %s2316_s19 = sshll.u32 %s2571_s15, 4  ;;  %s2317_s19 = int_to_ptr.vmem [resolvable:$false] %s2316_s19 }
  0x40   : > { %s293_s18 = scalar_lea.hbm %s3417_s3, %s1987_s20  ;;  %s2318_s3 = scalar_lea.vmem %s2317_s19, 2048 }
  0x41   : > { %s2759_s14 = scalar_lea.hbm %s3419_s4, %s1987_s20  ;;  %p2315_p7 = pneg %p2314_p8 }
  0x42   : > { %p2319_p0 = scmp.lt.s32.totalorder %s295_s9, %s2317_s19  ;;  %p2320_p1 = scmp.lt.s32.totalorder %s2318_s3, %s2311_s24 }
  0x44   : > { %p2321_p10 = por %p2320_p1, %p2319_p0 }
  0x46   : > { %p2322_p5 = pnand %p2321_p10, %p2315_p7 }
  0x48   : > { %2325 = shalt.err (!%p2322_p5)
}
  0x49   : > { %s3381_s6 = smov 256   ;;  %s3383_s17 = smov 16  }
  0x4a   : > { %2022 = dma.hbm_to_vmem [thread:$0]  (!%p2751_p4), %s293_s18, 1024, %s295_s9, %s2761_s28, %s3381_s6, %s3381_s6, %s3383_s17  }
  0x4b   : > { %s308_s20 = scalar_lea.vmem [#allocation13], %s2742_s21  ;;  %s2574_s15 = smov [#allocation10]  }
  0x4c   : > { %s2775_s12 = sshll.u32 %s308_s20, 4  ;;  %s246_s19 = sshll.u32 %s2574_s15, 4  ;;  %s247_s19 = int_to_ptr.vmem [resolvable:$true] %s246_s19  ;;  %s2832_s12 = int_to_ptr.vmem [resolvable:$true] %s2775_s12 }
  0x4d   : > { %s2337_s3 = scalar_lea.vmem %s247_s19, 512  ;;  %p2345_p6 = scmp.lt.s32.totalorder %s247_s19, %s247_s19 }
  0x4e   : > { %p2338_p1 = scmp.ne.s32.totalorder %s247_s19, %s2337_s3  ;;  %p2346_p8 = scmp.lt.s32.totalorder %s2337_s3, %s2337_s3 }
  0x50   : > { %p2340_p5 = pnand %p2338_p1, %p2274_p13  ;;  %p2347_p7 = por %p2346_p8, %p2345_p6 }
  0x52   : > { %p2341_p10 = pneg %p2340_p5 }
  0x54   : > { %p2348_p0 = pnand %p2347_p7, %p2341_p10 }
  0x56   : > { %2351 = shalt.err (!%p2348_p0)
}
  0x57   : > { %s3420_s2 = sld [smem:[#allocation34_spill]]  ;;  %s39_s16 = sadd.s32 1, %s2558_s29 }
  0x58   : > { %s51_s18 = sadd.s32 1, %s2546_s26  ;;  %p40_p13 = scmp.ge.s32.totalorder %s39_s16, 8 }
  0x59   : > { %p58_p1 = scmp.ne.s32.totalorder %s2546_s26, %s2542_s25  ;;  %s260_s24 = sand.u32 1, %s2546_s26  }
  0x5a   : > { %s1937_s20 = sshll.u32 %s2558_s29, 5  ;;  %s3457_s16 = smov (%p40_p13, %s39_s16), 0 }
  0x5b   : > { %3421 = sst [smem:[#allocation32_spill]] %s3457_s16  ;;  %s3422_s15 = sadd.s32 1, %s2562_s30 }
  0x5c   : > { %s3459_s15 = smov (!%p40_p13, %s3422_s15), %s2562_s30  ;;  %s47_s3 = ssub.s32 %s2558_s29, %s3457_s16 }
  0x5d   : > { %2015 = dma.hbm_to_vmem [thread:$0]  (!%p2712_p11), %s3420_s2, 512, %s247_s19, [#allocation9], %s3381_s6, %s3381_s6, %s3383_s17  }
  0x5e   : > { %p3423_p5 = scmp.eq.s32.totalorder %s2566_s7, 0  ;;  %p44_p11 = scmp.ge.s32.totalorder %s3459_s15, 2 }
  0x5f   : > { %s1936_s19 = sshll.u32 %s260_s24, 8  ;;  %s1938_s9 = sshll.u32 %s2562_s30, 8 }
  0x60   : > { %p2803_p10 = por %p3423_p5, %p58_p1  ;;  %s3461_s15 = smov (%p44_p11, %s3459_s15), 0 }
  0x61   : > { %s270_s6 = sadd.s32 %s1938_s9, %s1937_s20  ;;  %s46_s17 = ssub.s32 %s2562_s30, %s3461_s15 }
  0x62   : > { %s1939_s5 = sshll.u32 %s270_s6, 7  ;;  %s48_s2 = sor.u32 %s47_s3, %s46_s17 }
  0x63   : > { %p117_p6 = scmp.eq.s32.totalorder %s46_s17, 0  ;;  %p49_p8 = scmp.eq.s32.totalorder %s48_s2, 0 }
  0x64   : > { %s272_s29 = scalar_lea.hbm %s3363_s0, %s1939_s5  ;;  %s3425_s27 = sadd.s32 1, %s2534_s23 }
  0x65   : > { %s2818_s11 = scalar_select %p117_p6, %s2534_s23, %s3425_s27  }
  0x66   : > { %s2821_s22 = scalar_select %p49_p8, %s2546_s26, %s51_s18  }
  0x67   : > { %s264_s8 = scalar_lea.vmem [#allocation5], %s1936_s19  ;;  %p3426_p7 = scmp.lt.s32.totalorder %s2566_s7, 16 }
  0x68   : > { %s273_s10 = sshll.u32 %s264_s8, 4  ;;  %s261_s2 = scalar_lea.sflag [#allocation6], %s260_s24  ;;  %s274_s10 = int_to_ptr.vmem [resolvable:$true] %s273_s10 }
  0x69   : > { %p2827_p0 = pnand %p3426_p7, %p2803_p10  ;;  %s2365_s4 = scalar_lea.vmem %s274_s10, 4096 }
  0x6a   : > { %p2366_p1 = scmp.ne.s32.totalorder %s274_s10, %s2365_s4  ;;  %s2575_s5 = smov [#allocation5]  }
  0x6b   : > { %p2354_p13 = pneg %p2827_p0  ;;  %s2370_s27 = sshll.u32 %s2575_s5, 4  ;;  %s2371_s27 = int_to_ptr.vmem [resolvable:$false] %s2370_s27 }
  0x6c   : > { %s2372_s8 = scalar_lea.vmem %s2371_s27, 8192  ;;  %p2373_p6 = scmp.lt.s32.totalorder %s274_s10, %s2371_s27 }
  0x6d   : > { %p2368_p5 = pnand %p2366_p1, %p2354_p13  ;;  %p2374_p10 = scmp.lt.s32.totalorder %s2372_s8, %s2365_s4 }
  0x6f   : > { %p2369_p11 = pneg %p2368_p5  ;;  %p2375_p8 = por %p2374_p10, %p2373_p6 }
  0x71   : > { %p2376_p7 = pnand %p2375_p8, %p2369_p11 }
  0x73   : > { %2379 = shalt.err (!%p2376_p7)
}
  0x74   : > { %s3428_s6 = smov 16   ;;  %s3429_s17 = smov 256  }
  0x75   : > { %2019 = dma.hbm_to_vmem [thread:$0]  (!%p2827_p0), %s272_s29, 4096, %s274_s10, %s261_s2, %s3429_s17, %s3429_s17, %s3428_s6  }
  0x76   : > { %s2393_s16 = scalar_lea.vmem %s2832_s12, 1024  ;;  %s2576_s18 = smov [#allocation13]  }
  0x77   : > { %p2394_p13 = scmp.ne.s32.totalorder %s2832_s12, %s2393_s16  ;;  %s2398_s24 = sshll.u32 %s2576_s18, 4  ;;  %s2399_s24 = int_to_ptr.vmem [resolvable:$false] %s2398_s24 }
  0x78   : > { %s2400_s3 = scalar_lea.vmem %s2399_s24, 2048  ;;  %p2401_p11 = scmp.lt.s32.totalorder %s2832_s12, %s2399_s24 }
  0x79   : > { %p2396_p1 = pnand %p2394_p13, %p2300_p12  ;;  %p2402_p6 = scmp.lt.s32.totalorder %s2400_s3, %s2393_s16 }
  0x7b   : > { %p2397_p5 = pneg %p2396_p1  ;;  %p2403_p10 = por %p2402_p6, %p2401_p11 }
  0x7d   : > { %p2404_p8 = pnand %p2403_p10, %p2397_p5 }
  0x7f   : > { %2407 = shalt.err (!%p2404_p8)
}
  0x80   : > { %2025 = dma.hbm_to_vmem [thread:$0]  (!%p2751_p4), %s2759_s14, 1024, %s2832_s12, %s2761_s28, %s3429_s17, %s3429_s17, %s3428_s6  }
  0x81   : > { %327 = sbr.rel (%p2704_p9) target bundleno = 757 (0x2f5), region = 40  ;;  %s329_s10 = sand.u32 (!%p2704_p9), 1, %s2542_s25  }
  0x82   : > { %s1947_s21 = sshll.u32 (!%p2704_p9), %s329_s10, 8  ;;  %s330_s19 = scalar_lea.sflag (!%p2704_p9), [#allocation6], %s329_s10 }
  0x83   : > { %s2858_s9 = scalar_lea.vmem (!%p2704_p9), [#allocation5], %s1947_s21 }
  0x86   : > { %2505 = dma.done.wait (%p2688_p3), %s330_s19, 4096  }
  0x87   : > { %2507 = vsyncadd (%p2688_p3), %s330_s19, 4294963200  ;;  %s3431_s1 = sld [smem:[#allocation27_spill]] }
  0x8d   : > { %p3432_p12 = scmp.eq.s32.totalorder %s3431_s1, 0 }
  0x8f   : > { %2509 = dma.done.wait (%p3432_p12), [#allocation9], 6656   ;;  %p3433_p4 = pmov %p3432_p12 }
  0x90   : > { %s3434_s28 = sld [smem:[#allocation23_spill]]  ;;  %s346_s14 = sand.u32 1, %s3431_s1  }
  0x91   : > { %2511 = vsyncadd (%p3433_p4), [#allocation9], 4294960640  ;;  %s3435_s13 = sld [smem:[#allocation29_spill]]  ;;  %s347_s2 = scalar_lea.sflag [#allocation12], %s346_s14 }
  0x96   : > { %s2870_s12 = sand.u32 1, %s3434_s28  }
  0x97   : > { %s1950_s20 = sshll.u32 %s2870_s12, 6  ;;  %p3436_p9 = scmp.ne.s32.totalorder %s3435_s13, 0 }
  0x98   : > { %s2873_s4 = scalar_lea.vmem [#allocation11], %s1950_s20 }
  0x99   : > { %2513 = dma.done.wait (%p3436_p9), %s347_s2, 2048  }
  0x9a   : > { %2515 = vsyncadd (%p3436_p9), %s347_s2, 4294965248  ;;  %s2879_s5 = scalar_lea.vmem [#allocation13], %s1950_s20  ;;  %s2881_s27 = scalar_lea.vmem [#allocation14], %s1950_s20 }
  0x9b   : > { %s2883_s8 = scalar_lea.vmem [#allocation15], %s1950_s20  ;;  %s3437_s6 = sld [smem:[#allocation24_spill]] }
  0xa1   : > { %p1954_p3 = scmp.ne.s32.totalorder %s3437_s6, 0 }
  0xa3   : > { %406 = sbr.rel (%p1954_p3) target bundleno = 193 (0xc1), region = 64 }
  0xa8   : > { %v503_v0 = vld [vmem:[%s2873_s4] sm:$0xff]  ;;  %v504_v1 = vld [vmem:[%s2873_s4 + $0x8] sm:$0xff]  ;;  %v505_v2 = vld [vmem:[%s2873_s4 + $0x10] sm:$0xff]  ;;  %v2577_v3 = vmov 0.0  }
  0xa9   : > { %439 = vst [vmem:[#allocation4 + $0x2d8] sm:$0xff] %v2577_v3  ;;  %440 = vst [vmem:[#allocation4 + $0x220] sm:$0xff] %v2577_v3  ;;  %v506_v4 = vld [vmem:[%s2873_s4 + $0x18] sm:$0xff]  ;;  %v507_v5 = vld [vmem:[%s2873_s4 + $0x20] sm:$0xff] }
  0xaa   : > { %441 = vst [vmem:[#allocation4 + $0x198] sm:$0xff] %v2577_v3  ;;  %442 = vst [vmem:[#allocation4 + $0x250] sm:$0xff] %v2577_v3  ;;  %v508_v6 = vld [vmem:[%s2873_s4 + $0x28] sm:$0xff]  ;;  %v509_v7 = vld [vmem:[%s2873_s4 + $0x30] sm:$0xff] }
  0xab   : > { %443 = vst [vmem:[#allocation4 + $0x90] sm:$0xff] %v2577_v3  ;;  %444 = vst [vmem:[#allocation4 + $0x88] sm:$0xff] %v2577_v3  ;;  %v510_v8 = vld [vmem:[%s2873_s4 + $0x38] sm:$0xff]  ;;  %v519_v9 = vld [vmem:[%s2879_s5] sm:$0xff] }
  0xac   : > { %445 = vst [vmem:[#allocation4 + $0x258] sm:$0xff] %v2577_v3  ;;  %446 = vst [vmem:[#allocation4 + $0x28] sm:$0xff] %v2577_v3  ;;  %v520_v10 = vld [vmem:[%s2879_s5 + $0x8] sm:$0xff]  ;;  %v521_v11 = vld [vmem:[%s2879_s5 + $0x10] sm:$0xff] }
  0xad   : > { %479 = vst [vmem:[#allocation4] sm:$0xff] %v2577_v3  ;;  %480 = vst [vmem:[#allocation4 + $0x1f0] sm:$0xff] %v2577_v3  ;;  %v522_v12 = vld [vmem:[%s2879_s5 + $0x18] sm:$0xff]  ;;  %v523_v13 = vld [vmem:[%s2879_s5 + $0x20] sm:$0xff] }
  0xae   : > { %481 = vst [vmem:[#allocation4 + $0x2b0] sm:$0xff] %v2577_v3  ;;  %482 = vst [vmem:[#allocation4 + $0x1b0] sm:$0xff] %v2577_v3  ;;  %v524_v14 = vld [vmem:[%s2879_s5 + $0x28] sm:$0xff]  ;;  %v525_v15 = vld [vmem:[%s2879_s5 + $0x30] sm:$0xff] }
  0xaf   : > { %483 = vst [vmem:[#allocation4 + $0x100] sm:$0xff] %v2577_v3  ;;  %484 = vst [vmem:[#allocation4 + $0x1d0] sm:$0xff] %v2577_v3  ;;  %v526_v16 = vld [vmem:[%s2879_s5 + $0x38] sm:$0xff] }
  0xb0   : > { %485 = vst [vmem:[#allocation4 + $0x98] sm:$0xff] %v2577_v3  ;;  %486 = vst [vmem:[#allocation4 + $0x1a8] sm:$0xff] %v2577_v3 }
  0xb1   : > { %487 = vst [vmem:[#allocation4 + $0xb0] sm:$0xff] %v2577_v3  ;;  %488 = vst [vmem:[#allocation4 + $0x170] sm:$0xff] %v2577_v3 }
  0xb2   : > { %489 = vst [vmem:[#allocation4 + $0x128] sm:$0xff] %v2577_v3  ;;  %490 = vst [vmem:[#allocation4 + $0x48] sm:$0xff] %v2577_v3 }
  0xb3   : > { %491 = vst [vmem:[#allocation4 + $0x1b8] sm:$0xff] %v2577_v3  ;;  %492 = vst [vmem:[#allocation4 + $0x178] sm:$0xff] %v2577_v3 }
  0xb4   : > { %493 = vst [vmem:[#allocation4 + $0x208] sm:$0xff] %v2577_v3  ;;  %494 = vst [vmem:[#allocation4 + $0x2a0] sm:$0xff] %v2577_v3 }
  0xb5   : > { %495 = vst [vmem:[#allocation4 + $0x118] sm:$0xff] %v2577_v3  ;;  %496 = vst [vmem:[#allocation4 + $0x248] sm:$0xff] %v2577_v3 }
  0xb6   : > { %497 = vst [vmem:[#allocation4 + $0x1a0] sm:$0xff] %v2577_v3  ;;  %498 = vst [vmem:[#allocation4 + $0xb8] sm:$0xff] %v2577_v3 }
  0xb7   : > { %499 = vst [vmem:[#allocation4 + $0x240] sm:$0xff] %v2577_v3  ;;  %500 = vst [vmem:[#allocation4 + $0x160] sm:$0xff] %v2577_v3 }
  0xb8   : > { %501 = vst [vmem:[#allocation4 + $0x2e8] sm:$0xff] %v2577_v3  ;;  %502 = vst [vmem:[#allocation4 + $0x50] sm:$0xff] %v2577_v3 }
  0xb9   : > { %511 = vst [vmem:[#allocation2 + $0x30] sm:$0xff] %v503_v0  ;;  %512 = vst [vmem:[#allocation2] sm:$0xff] %v504_v1 }
  0xba   : > { %513 = vst [vmem:[#allocation2 + $0x18] sm:$0xff] %v505_v2  ;;  %514 = vst [vmem:[#allocation2 + $0x10] sm:$0xff] %v506_v4 }
  0xbb   : > { %515 = vst [vmem:[#allocation2 + $0x8] sm:$0xff] %v507_v5  ;;  %516 = vst [vmem:[#allocation2 + $0x20] sm:$0xff] %v508_v6 }
  0xbc   : > { %517 = vst [vmem:[#allocation2 + $0x28] sm:$0xff] %v509_v7  ;;  %518 = vst [vmem:[#allocation2 + $0x38] sm:$0xff] %v510_v8 }
  0xbd   : > { %527 = vst [vmem:[#allocation3] sm:$0xff] %v519_v9  ;;  %528 = vst [vmem:[#allocation3 + $0x18] sm:$0xff] %v520_v10 }
  0xbe   : > { %529 = vst [vmem:[#allocation3 + $0x10] sm:$0xff] %v521_v11  ;;  %530 = vst [vmem:[#allocation3 + $0x20] sm:$0xff] %v522_v12 }
  0xbf   : > { %531 = vst [vmem:[#allocation3 + $0x28] sm:$0xff] %v523_v13  ;;  %532 = vst [vmem:[#allocation3 + $0x8] sm:$0xff] %v524_v14 }
  0xc0   : > { %533 = vst [vmem:[#allocation3 + $0x30] sm:$0xff] %v525_v15  ;;  %534 = vst [vmem:[#allocation3 + $0x38] sm:$0xff] %v526_v16 }
  0xc1 PF: > { %s2578_s17 = smov 1   ;;  %v2915_v21 = vld [vmem:[#allocation2 + $0x10] sm:$0xff]  ;;  %v2917_v22 = vld [vmem:[#allocation2 + $0x18] sm:$0xff]  ;;  %v2922_v23 = vld [vmem:[#allocation2] sm:$0xff]  ;;  %s2579_s16 = smov 15   ;;  %v559_v46 = vlaneseq  ;;  %v2586_v60 = vmov 0.0  }
  0xc2   : > { %v2904_v18 = vld [vmem:[#allocation2 + $0x8] sm:$0xff]  ;;  %v2913_v20 = vld [vmem:[#allocation2 + $0x20] sm:$0xff]  ;;  %763 = vst [vmem:[#allocation4 + $0x250] sm:$0xff] %v2915_v21  ;;  %762 = vst [vmem:[#allocation4 + $0x198] sm:$0xff] %v2917_v22  ;;  %s2580_s18 = smov 16   ;;  %s2581_s24 = smov 17   ;;  %1385 = vmatprep.mubr.f32.mxu1 %v2586_v60 }
  0xc3   : > { %v2902_v17 = vld [vmem:[#allocation2 + $0x28] sm:$0xff]  ;;  %v2906_v19 = vld [vmem:[#allocation2 + $0x38] sm:$0xff]  ;;  %710 = vrot.lane.b32.xlu1 %v2904_v18, %s2578_s17  ;;  %764 = vst [vmem:[#allocation4 + $0x90] sm:$0xff] %v2904_v18  ;;  %765 = vst [vmem:[#allocation4 + $0x88] sm:$0xff] %v2913_v20  ;;  %s2582_s3 = smov 112   ;;  %s2583_s29 = smov 113  }
  0xc4   : > { %712 = vrot.lane.b32.xlu0 %v2902_v17, %s2578_s17  ;;  %766 = vst [vmem:[#allocation4 + $0x258] sm:$0xff] %v2902_v17  ;;  %767 = vst [vmem:[#allocation4 + $0x28] sm:$0xff] %v2906_v19  ;;  %v2924_v24 = vld [vmem:[#allocation2 + $0x30] sm:$0xff]  ;;  %v1126_v26 = vld [vmem:[#allocation4 + $0x2e8] sm:$0xff]  ;;  %s2584_s10 = smov 127   ;;  %v573_v50 = vshrl.u32 %v559_v46, 7 }
  0xc5   : > { %761 = vst [vmem:[#allocation4 + $0x220] sm:$0xff] %v2922_v23  ;;  %760 = vst [vmem:[#allocation4 + $0x2d8] sm:$0xff] %v2924_v24  ;;  %v1127_v25 = vld [vmem:[#allocation4 + $0x50] sm:$0xff]  ;;  %v1125_v27 = vld [vmem:[#allocation4 + $0x160] sm:$0xff]  ;;  %s2585_s21 = smov 111   ;;  %v2994_v52 = vand.u32 127, %v559_v46 }
  0xc6   : > { %1321 = vmatprep.subr.mxu1 %v1127_v25  ;;  %v1124_v28 = vld [vmem:[#allocation4 + $0x240] sm:$0xff]  ;;  %v1123_v29 = vld [vmem:[#allocation4 + $0xb8] sm:$0xff]  ;;  %v1121_v31 = vld [vmem:[#allocation4 + $0x248] sm:$0xff]  ;;  %v2996_v53 = vsub.s32 0, %v573_v50  ;;  %v2998_v54 = vsub.s32 1, %v573_v50  ;;  %s3438_s19 = sld [smem:[#allocation25_spill]] }
  0xc7   : > { %718 = vrot.lane.b32.xlu1 %v2913_v20, %s2578_s17  ;;  %1322 = vmatpush1.msra.mxu1 %v1126_v26  ;;  %v1122_v30 = vld [vmem:[#allocation4 + $0x1a0] sm:$0xff]  ;;  %v1120_v32 = vld [vmem:[#allocation4 + $0x118] sm:$0xff]  ;;  %v1118_v34 = vld [vmem:[#allocation4 + $0x208] sm:$0xff]  ;;  %vm722_vm0 = vcmp.lt.s32.totalorder %v2994_v52, 1  ;;  %vm668_vm1 = vcmp.lt.s32.totalorder %v2994_v52, 15  ;;  %vm614_vm2 = vcmp.lt.s32.totalorder %v2994_v52, 16 }
  0xc8   : > { %720 = vrot.lane.b32.xlu0 %v2906_v19, %s2578_s17  ;;  %1323 = vmatprep.subr.mxu1 %v1125_v27  ;;  %v1119_v33 = vld [vmem:[#allocation4 + $0x2a0] sm:$0xff]  ;;  %v1117_v35 = vld [vmem:[#allocation4 + $0x178] sm:$0xff]  ;;  %v1115_v37 = vld [vmem:[#allocation4 + $0x48] sm:$0xff]  ;;  %vm561_vm3 = vcmp.lt.s32.totalorder %v2994_v52, 17  ;;  %vm892_vm4 = vcmp.lt.s32.totalorder %v2994_v52, 112  ;;  %vm838_vm5 = vcmp.lt.s32.totalorder %v2994_v52, 113 }
  0xc9   : > { %1324 = vmatpush1.msra.mxu1 %v1124_v28  ;;  %v1116_v36 = vld [vmem:[#allocation4 + $0x1b8] sm:$0xff]  ;;  %v1114_v38 = vld [vmem:[#allocation4 + $0x128] sm:$0xff]  ;;  %v1113_v39 = vld [vmem:[#allocation4 + $0x170] sm:$0xff]  ;;  %vm784_vm6 = vcmp.lt.s32.totalorder %v2994_v52, 127  ;;  %vm946_vm7 = vcmp.lt.s32.totalorder %v2994_v52, 111  ;;  %s1749_s1 = sshll.u32 %s2883_s8, 4  ;;  %s3255_s1 = int_to_ptr.vmem [resolvable:$true] %s1749_s1 }
  0xca   : > { %1325 = vmatprep.subr.mxu1 %v1123_v29  ;;  %v1112_v40 = vld [vmem:[#allocation4 + $0xb0] sm:$0xff]  ;;  %v1111_v41 = vld [vmem:[#allocation4 + $0x1a8] sm:$0xff]  ;;  %v1110_v42 = vld [vmem:[#allocation4 + $0x98] sm:$0xff]  ;;  %s3440_s20 = sld [smem:[#allocation38_spill]]  ;;  %s1720_s4 = scalar_lea.sflag [#allocation16], %s2870_s12 }
  0xcb   : > { %716 = vrot.lane.b32.xlu1 %v2915_v21, %s2578_s17  ;;  %1326 = vmatpush1.msra.mxu1 %v1122_v30  ;;  %v1109_v43 = vld [vmem:[#allocation4 + $0x1d0] sm:$0xff]  ;;  %v1108_v44 = vld [vmem:[#allocation4 + $0x100] sm:$0xff]  ;;  %v985_v51 = vld [vmem:[#allocation8 + $0x8] sm:$0xff]  ;;  %s2408_s5 = scalar_lea.vmem %s3255_s1, 1024  ;;  %s2587_s6 = smov [#allocation15]  }
  0xcc   : > { %708 = vrot.lane.b32.xlu0 %v2917_v22, %s2578_s17  ;;  %1327 = vmatprep.subr.mxu1 %v1121_v31  ;;  %v1107_v45 = vld [vmem:[#allocation4 + $0x1b0] sm:$0xff]  ;;  %v1104_v49 = vld [vmem:[#allocation4] sm:$0xff]  ;;  %p2409_p0 = scmp.ne.s32.totalorder %s3255_s1, %s2408_s5 }
  0xcd   : > { %1328 = vmatpush1.msra.mxu1 %v1120_v32  ;;  %v1106_v47 = vld [vmem:[#allocation4 + $0x2b0] sm:$0xff]  ;;  %v732_v55 = vld [vmem:[#allocation10 + $0x3] ss:$8 sm:$0x3]  ;;  %1224 = vmatprep.mubr.f32.mxu0 %v985_v51 }
  0xce   : > { %1329 = vmatprep.subr.mxu1 %v1119_v33  ;;  %v1105_v48 = vld [vmem:[#allocation4 + $0x1f0] sm:$0xff]  ;;  %v737_v58 = vrot.slane %v732_v55, %v2996_v53  ;;  %v741_v59 = vrot.slane %v732_v55, %v2998_v54  ;;  %v678_v13 = vld [vmem:[#allocation10 + $0x2] ss:$8 sm:$0x3]  ;;  %p2410_p7 = pnand %p2409_p0, %p2736_p2 }
  0xcf   : > { %714 = vrot.lane.b32.xlu1 %v2922_v23, %s2578_s17  ;;  %1330 = vmatpush1.msra.mxu1 %v1118_v34  ;;  %v996_v52 = vld [vmem:[#allocation8 + $0x60] sm:$0xff] }
  0xd0   : > { %706 = vrot.lane.b32.xlu0 %v2924_v24, %s2578_s17  ;;  %1331 = vmatprep.subr.mxu1 %v1117_v35  ;;  %p2411_p13 = pneg %p2410_p7  ;;  %s2412_s17 = sshll.u32 %s2587_s6, 4  ;;  %s2413_s17 = int_to_ptr.vmem [resolvable:$false] %s2412_s17 }
  0xd1   : > { %1332 = vmatpush1.msra.mxu1 %v1116_v36  ;;  %p2415_p1 = scmp.lt.s32.totalorder %s3255_s1, %s2413_s17 }
  0xd2   : > { %1333 = vmatprep.subr.mxu1 %v1115_v37 }
  0xd3   : > { %666 = vrot.lane.b32.xlu1 %v2906_v19, %s2579_s16  ;;  %1334 = vmatpush1.msra.mxu1 %v1114_v38 }
  0xd4   : > { %658 = vrot.lane.b32.xlu0 %v2902_v17, %s2579_s16  ;;  %1335 = vmatprep.subr.mxu1 %v1113_v39 }
  0xd5   : > { %1336 = vmatpush1.msra.mxu1 %v1112_v40  ;;  %v624_v40 = vld [vmem:[#allocation10 + $0x1] ss:$8 sm:$0x3] }
  0xd6   : > { %1337 = vmatprep.subr.mxu1 %v1111_v41 }
  0xd7   : > { %664 = vrot.lane.b32.xlu1 %v2913_v20, %s2579_s16  ;;  %1338 = vmatpush1.msra.mxu1 %v1110_v42 }
  0xd8   : > { %656 = vrot.lane.b32.xlu0 %v2904_v18, %s2579_s16  ;;  %1339 = vmatprep.subr.mxu1 %v1109_v43 }
  0xd9   : > { %1340 = vmatpush1.msra.mxu1 %v1108_v44 }
  0xda   : > { %1341 = vmatprep.subr.mxu1 %v1107_v45 }
  0xdb   : > { %662 = vrot.lane.b32.xlu1 %v2915_v21, %s2579_s16  ;;  %1342 = vmatpush1.msra.mxu1 %v1106_v47  ;;  %v629_v47 = vrot.slane %v624_v40, %v2996_v53 }
  0xdc   : > { %654 = vrot.lane.b32.xlu0 %v2917_v22, %s2579_s16  ;;  %1343 = vmatprep.subr.mxu1 %v1105_v48  ;;  %v633_v48 = vrot.slane %v624_v40, %v2998_v54 }
  0xdd   : > { %1344 = vmatpush1.msra.mxu1 %v1104_v49 }
  0xdf   : > { %660 = vrot.lane.b32.xlu1 %v2922_v23, %s2579_s16 }
  0xe0   : > { %652 = vrot.lane.b32.xlu0 %v2924_v24, %s2579_s16  ;;  %s2414_s16 = scalar_lea.vmem %s2413_s17, 2048 }
  0xe1   : > { %p2416_p5 = scmp.lt.s32.totalorder %s2414_s16, %s2408_s5 }
  0xe3   : > { %612 = vrot.lane.b32.xlu1 %v2906_v19, %s2580_s18  ;;  %p2417_p11 = por %p2416_p5, %p2415_p1 }
  0xe4   : > { %604 = vrot.lane.b32.xlu0 %v2902_v17, %s2580_s18 }
  0xe5   : > { %p2418_p6 = pnand %p2417_p11, %p2411_p13 }
  0xe7   : > { %610 = vrot.lane.b32.xlu1 %v2913_v20, %s2580_s18 }
  0xe8   : > { %602 = vrot.lane.b32.xlu0 %v2904_v18, %s2580_s18 }
  0xeb   : > { %608 = vrot.lane.b32.xlu1 %v2915_v21, %s2580_s18 }
  0xec   : > { %600 = vrot.lane.b32.xlu0 %v2917_v22, %s2580_s18 }
  0xef   : > { %606 = vrot.lane.b32.xlu1 %v2922_v23, %s2580_s18 }
  0xf0   : > { %598 = vrot.lane.b32.xlu0 %v2924_v24, %s2580_s18 }
  0xf3   : > { %557 = vrot.lane.b32.xlu1 %v2906_v19, %s2581_s24 }
  0xf4   : > { %549 = vrot.lane.b32.xlu0 %v2902_v17, %s2581_s24 }
  0xf7   : > { %555 = vrot.lane.b32.xlu1 %v2913_v20, %s2581_s24 }
  0xf8   : > { %547 = vrot.lane.b32.xlu0 %v2904_v18, %s2581_s24 }
  0xfb   : > { %553 = vrot.lane.b32.xlu1 %v2915_v21, %s2581_s24 }
  0xfc   : > { %545 = vrot.lane.b32.xlu0 %v2917_v22, %s2581_s24 }
  0xff   : > { %551 = vrot.lane.b32.xlu1 %v2922_v23, %s2581_s24 }
 0x100   : > { %543 = vrot.lane.b32.xlu0 %v2924_v24, %s2581_s24 }
 0x103   : > { %890 = vrot.lane.b32.xlu1 %v2906_v19, %s2582_s3 }
 0x104   : > { %882 = vrot.lane.b32.xlu0 %v2902_v17, %s2582_s3 }
 0x107   : > { %888 = vrot.lane.b32.xlu1 %v2913_v20, %s2582_s3 }
 0x108   : > { %880 = vrot.lane.b32.xlu0 %v2904_v18, %s2582_s3 }
 0x10b   : > { %886 = vrot.lane.b32.xlu1 %v2915_v21, %s2582_s3 }
 0x10c   : > { %878 = vrot.lane.b32.xlu0 %v2917_v22, %s2582_s3 }
 0x10f   : > { %884 = vrot.lane.b32.xlu1 %v2922_v23, %s2582_s3 }
 0x110   : > { %876 = vrot.lane.b32.xlu0 %v2924_v24, %s2582_s3 }
 0x113   : > { %836 = vrot.lane.b32.xlu1 %v2906_v19, %s2583_s29 }
 0x114   : > { %828 = vrot.lane.b32.xlu0 %v2902_v17, %s2583_s29 }
 0x117   : > { %834 = vrot.lane.b32.xlu1 %v2913_v20, %s2583_s29 }
 0x118   : > { %826 = vrot.lane.b32.xlu0 %v2904_v18, %s2583_s29 }
 0x11b   : > { %832 = vrot.lane.b32.xlu1 %v2915_v21, %s2583_s29 }
 0x11c   : > { %824 = vrot.lane.b32.xlu0 %v2917_v22, %s2583_s29 }
 0x11f   : > { %830 = vrot.lane.b32.xlu1 %v2922_v23, %s2583_s29 }
 0x120   : > { %822 = vrot.lane.b32.xlu0 %v2924_v24, %s2583_s29 }
 0x123   : > { %782 = vrot.lane.b32.xlu1 %v2906_v19, %s2584_s10 }
 0x124   : > { %774 = vrot.lane.b32.xlu0 %v2902_v17, %s2584_s10 }
 0x127   : > { %780 = vrot.lane.b32.xlu1 %v2913_v20, %s2584_s10 }
 0x128   : > { %772 = vrot.lane.b32.xlu0 %v2904_v18, %s2584_s10 }
 0x12b   : > { %778 = vrot.lane.b32.xlu1 %v2915_v21, %s2584_s10 }
 0x12c   : > { %770 = vrot.lane.b32.xlu0 %v2917_v22, %s2584_s10 }
 0x12f   : > { %776 = vrot.lane.b32.xlu1 %v2922_v23, %s2584_s10 }
 0x130   : > { %768 = vrot.lane.b32.xlu0 %v2924_v24, %s2584_s10 }
 0x133   : > { %944 = vrot.lane.b32.xlu1 %v2906_v19, %s2585_s21 }
 0x134   : > { %936 = vrot.lane.b32.xlu0 %v2902_v17, %s2585_s21 }
 0x135   : > { %v711_v57 = vpop.permute.xlu1 %710 }
 0x136   : > { %v713_v56 = vpop.permute.xlu0 %712 }
 0x137   : > { %942 = vrot.lane.b32.xlu1 %v2913_v20, %s2585_s21  ;;  %v683_v20 = vrot.slane %v678_v13, %v2996_v53 }
 0x138   : > { %934 = vrot.lane.b32.xlu0 %v2904_v18, %s2585_s21 }
 0x139   : > { %v719_v62 = vpop.permute.xlu1 %718 }
 0x13a   : > { %v721_v61 = vpop.permute.xlu0 %720  ;;  %v725_v1 = vsel %vm722_vm0, %v711_v57, %v719_v62  ;;  %v729_v2 = vsel %vm722_vm0, %v719_v62, %v711_v57 }
 0x13b   : > { %v726_v63 = vsel %vm722_vm0, %v713_v56, %v721_v61  ;;  %v730_v0 = vsel %vm722_vm0, %v721_v61, %v713_v56  ;;  %v748_v5 = vmul.f32 %v737_v58, %v729_v2  ;;  %v749_v6 = vmul.f32 %v741_v59, %v725_v1  ;;  %940 = vrot.lane.b32.xlu1 %v2915_v21, %s2585_s21 }
 0x13c   : > { %v750_v3 = vmul.f32 %v737_v58, %v730_v0  ;;  %v751_v4 = vmul.f32 %v741_v59, %v726_v63  ;;  %932 = vrot.lane.b32.xlu0 %v2917_v22, %s2585_s21  ;;  %v687_v21 = vrot.slane %v678_v13, %v2998_v54 }
 0x13d   : > { %v717_v7 = vpop.permute.xlu1 %716 }
 0x13e   : > { %v709_v8 = vpop.permute.xlu0 %708  ;;  %1160 = vmatprep.subr.mxu0 %v751_v4 }
 0x13f   : > { %v724_v9 = vsel %vm722_vm0, %v709_v8, %v717_v7  ;;  %v728_v10 = vsel %vm722_vm0, %v717_v7, %v709_v8  ;;  %1161 = vmatpush1.msra.mxu0 %v750_v3  ;;  %938 = vrot.lane.b32.xlu1 %v2922_v23, %s2585_s21  ;;  %v570_v7 = vld [vmem:[#allocation10] ss:$8 sm:$0x3] }
 0x140   : > { %v746_v11 = vmul.f32 %v737_v58, %v728_v10  ;;  %v747_v12 = vmul.f32 %v741_v59, %v724_v9  ;;  %1162 = vmatprep.subr.mxu0 %v749_v6  ;;  %930 = vrot.lane.b32.xlu0 %v2924_v24, %s2585_s21 }
 0x141   : > { %1163 = vmatpush1.msra.mxu0 %v748_v5  ;;  %v715_v14 = vpop.permute.xlu1 %714 }
 0x142   : > { %v707_v15 = vpop.permute.xlu0 %706  ;;  %1164 = vmatprep.subr.mxu0 %v747_v12 }
 0x143   : > { %v723_v16 = vsel %vm722_vm0, %v707_v15, %v715_v14  ;;  %v727_v17 = vsel %vm722_vm0, %v715_v14, %v707_v15  ;;  %1165 = vmatpush1.msra.mxu0 %v746_v11  ;;  %v575_v14 = vrot.slane %v570_v7, %v2996_v53  ;;  %v579_v15 = vrot.slane %v570_v7, %v2998_v54 }
 0x144   : > { %v744_v18 = vmul.f32 %v737_v58, %v727_v17  ;;  %v745_v19 = vmul.f32 %v741_v59, %v723_v16 }
 0x145   : > { %v667_v22 = vpop.permute.xlu1 %666 }
 0x146   : > { %v659_v23 = vpop.permute.xlu0 %658  ;;  %1166 = vmatprep.subr.mxu0 %v745_v19 }
 0x147   : > { %v672_v24 = vsel %vm668_vm1, %v659_v23, %v667_v22  ;;  %v676_v25 = vsel %vm668_vm1, %v667_v22, %v659_v23  ;;  %1167 = vmatpush1.msra.mxu0 %v744_v18 }
 0x148   : > { %v696_v26 = vmul.f32 %v683_v20, %v676_v25  ;;  %v697_v27 = vmul.f32 %v687_v21, %v672_v24 }
 0x149   : > { %v665_v28 = vpop.permute.xlu1 %664 }
 0x14a   : > { %v657_v29 = vpop.permute.xlu0 %656  ;;  %1168 = vmatprep.subr.mxu0 %v697_v27 }
 0x14b   : > { %v671_v30 = vsel %vm668_vm1, %v657_v29, %v665_v28  ;;  %v675_v31 = vsel %vm668_vm1, %v665_v28, %v657_v29  ;;  %1169 = vmatpush1.msra.mxu0 %v696_v26 }
 0x14c   : > { %v694_v32 = vmul.f32 %v683_v20, %v675_v31  ;;  %v695_v33 = vmul.f32 %v687_v21, %v671_v30 }
 0x14d   : > { %v663_v34 = vpop.permute.xlu1 %662 }
 0x14e   : > { %v655_v35 = vpop.permute.xlu0 %654  ;;  %1170 = vmatprep.subr.mxu0 %v695_v33 }
 0x14f   : > { %v670_v36 = vsel %vm668_vm1, %v655_v35, %v663_v34  ;;  %v674_v37 = vsel %vm668_vm1, %v663_v34, %v655_v35  ;;  %1171 = vmatpush1.msra.mxu0 %v694_v32  ;;  %v902_v34 = vld [vmem:[#allocation10 + $0x7] ss:$8 sm:$0x3] }
 0x150   : > { %v692_v38 = vmul.f32 %v683_v20, %v674_v37  ;;  %v693_v39 = vmul.f32 %v687_v21, %v670_v36 }
 0x151   : > { %v661_v41 = vpop.permute.xlu1 %660 }
 0x152   : > { %v653_v42 = vpop.permute.xlu0 %652  ;;  %1172 = vmatprep.subr.mxu0 %v693_v39 }
 0x153   : > { %v669_v43 = vsel %vm668_vm1, %v653_v42, %v661_v41  ;;  %v673_v44 = vsel %vm668_vm1, %v661_v41, %v653_v42  ;;  %1173 = vmatpush1.msra.mxu0 %v692_v38  ;;  %v907_v41 = vrot.slane %v902_v34, %v2996_v53  ;;  %v911_v42 = vrot.slane %v902_v34, %v2998_v54 }
 0x154   : > { %v690_v45 = vmul.f32 %v683_v20, %v673_v44  ;;  %v691_v46 = vmul.f32 %v687_v21, %v669_v43 }
 0x155   : > { %v613_v49 = vpop.permute.xlu1 %612 }
 0x156   : > { %v605_v50 = vpop.permute.xlu0 %604  ;;  %1174 = vmatprep.subr.mxu0 %v691_v46 }
 0x157   : > { %v618_v51 = vsel %vm614_vm2, %v605_v50, %v613_v49  ;;  %v622_v55 = vsel %vm614_vm2, %v613_v49, %v605_v50  ;;  %1175 = vmatpush1.msra.mxu0 %v690_v45 }
 0x158   : > { %v642_v56 = vmul.f32 %v629_v47, %v622_v55  ;;  %v643_v57 = vmul.f32 %v633_v48, %v618_v51 }
 0x159   : > { %v611_v58 = vpop.permute.xlu1 %610 }
 0x15a   : > { %v603_v59 = vpop.permute.xlu0 %602  ;;  %1176 = vmatprep.subr.mxu0 %v643_v57 }
 0x15b   : > { %v617_v61 = vsel %vm614_vm2, %v603_v59, %v611_v58  ;;  %v621_v62 = vsel %vm614_vm2, %v611_v58, %v603_v59  ;;  %1177 = vmatpush1.msra.mxu0 %v642_v56 }
 0x15c   : > { %v640_v63 = vmul.f32 %v629_v47, %v621_v62  ;;  %v641_v0 = vmul.f32 %v633_v48, %v617_v61 }
 0x15d   : > { %v609_v1 = vpop.permute.xlu1 %608 }
 0x15e   : > { %v601_v2 = vpop.permute.xlu0 %600  ;;  %1178 = vmatprep.subr.mxu0 %v641_v0 }
 0x15f   : > { %v616_v3 = vsel %vm614_vm2, %v601_v2, %v609_v1  ;;  %v620_v4 = vsel %vm614_vm2, %v609_v1, %v601_v2  ;;  %1179 = vmatpush1.msra.mxu0 %v640_v63  ;;  %v848_v1 = vld [vmem:[#allocation10 + $0x6] ss:$8 sm:$0x3] }
 0x160   : > { %v638_v5 = vmul.f32 %v629_v47, %v620_v4  ;;  %v639_v6 = vmul.f32 %v633_v48, %v616_v3 }
 0x161   : > { %v607_v8 = vpop.permute.xlu1 %606 }
 0x162   : > { %v599_v9 = vpop.permute.xlu0 %598  ;;  %1180 = vmatprep.subr.mxu0 %v639_v6 }
 0x163   : > { %v615_v10 = vsel %vm614_vm2, %v599_v9, %v607_v8  ;;  %v619_v11 = vsel %vm614_vm2, %v607_v8, %v599_v9  ;;  %1181 = vmatpush1.msra.mxu0 %v638_v5  ;;  %v853_v8 = vrot.slane %v848_v1, %v2996_v53  ;;  %v857_v9 = vrot.slane %v848_v1, %v2998_v54 }
 0x164   : > { %v636_v12 = vmul.f32 %v629_v47, %v619_v11  ;;  %v637_v13 = vmul.f32 %v633_v48, %v615_v10 }
 0x165   : > { %v558_v16 = vpop.permute.xlu1 %557 }
 0x166   : > { %v550_v17 = vpop.permute.xlu0 %549  ;;  %1182 = vmatprep.subr.mxu0 %v637_v13 }
 0x167   : > { %v565_v18 = vsel %vm561_vm3, %v550_v17, %v558_v16  ;;  %v569_v19 = vsel %vm561_vm3, %v558_v16, %v550_v17  ;;  %1183 = vmatpush1.msra.mxu0 %v636_v12 }
 0x168   : > { %v588_v20 = vmul.f32 %v575_v14, %v569_v19  ;;  %v589_v21 = vmul.f32 %v579_v15, %v565_v18 }
 0x169   : > { %v556_v22 = vpop.permute.xlu1 %555 }
 0x16a   : > { %v548_v23 = vpop.permute.xlu0 %547  ;;  %1184 = vmatprep.subr.mxu0 %v589_v21 }
 0x16b   : > { %v564_v24 = vsel %vm561_vm3, %v548_v23, %v556_v22  ;;  %v568_v25 = vsel %vm561_vm3, %v556_v22, %v548_v23  ;;  %1185 = vmatpush1.msra.mxu0 %v588_v20 }
 0x16c   : > { %v586_v26 = vmul.f32 %v575_v14, %v568_v25  ;;  %v587_v27 = vmul.f32 %v579_v15, %v564_v24 }
 0x16d   : > { %v554_v28 = vpop.permute.xlu1 %553 }
 0x16e   : > { %v546_v29 = vpop.permute.xlu0 %545  ;;  %1186 = vmatprep.subr.mxu0 %v587_v27 }
 0x16f   : > { %v563_v30 = vsel %vm561_vm3, %v546_v29, %v554_v28  ;;  %v567_v31 = vsel %vm561_vm3, %v554_v28, %v546_v29  ;;  %1187 = vmatpush1.msra.mxu0 %v586_v26  ;;  %v794_v28 = vld [vmem:[#allocation10 + $0x5] ss:$8 sm:$0x3] }
 0x170   : > { %v584_v32 = vmul.f32 %v575_v14, %v567_v31  ;;  %v585_v33 = vmul.f32 %v579_v15, %v563_v30 }
 0x171   : > { %v552_v35 = vpop.permute.xlu1 %551 }
 0x172   : > { %v544_v36 = vpop.permute.xlu0 %543  ;;  %1188 = vmatprep.subr.mxu0 %v585_v33 }
 0x173   : > { %v562_v37 = vsel %vm561_vm3, %v544_v36, %v552_v35  ;;  %v566_v38 = vsel %vm561_vm3, %v552_v35, %v544_v36  ;;  %1189 = vmatpush1.msra.mxu0 %v584_v32  ;;  %v799_v35 = vrot.slane %v794_v28, %v2996_v53  ;;  %v803_v36 = vrot.slane %v794_v28, %v2998_v54 }
 0x174   : > { %v582_v39 = vmul.f32 %v575_v14, %v566_v38  ;;  %v583_v40 = vmul.f32 %v579_v15, %v562_v37 }
 0x175   : > { %v891_v43 = vpop.permute.xlu1 %890 }
 0x176   : > { %v883_v44 = vpop.permute.xlu0 %882  ;;  %1190 = vmatprep.subr.mxu0 %v583_v40 }
 0x177   : > { %v896_v45 = vsel %vm892_vm4, %v883_v44, %v891_v43  ;;  %v900_v46 = vsel %vm892_vm4, %v891_v43, %v883_v44  ;;  %1191 = vmatpush1.msra.mxu0 %v582_v39 }
 0x178   : > { %v920_v47 = vmul.f32 %v907_v41, %v896_v45  ;;  %v921_v48 = vmul.f32 %v911_v42, %v900_v46 }
 0x179   : > { %v889_v49 = vpop.permute.xlu1 %888 }
 0x17a   : > { %v881_v50 = vpop.permute.xlu0 %880  ;;  %1192 = vmatprep.subr.mxu0 %v921_v48 }
 0x17b   : > { %v895_v51 = vsel %vm892_vm4, %v881_v50, %v889_v49  ;;  %v899_v55 = vsel %vm892_vm4, %v889_v49, %v881_v50  ;;  %1193 = vmatpush2.msra.mxu0 %v920_v47 }
 0x17c   : > { %v918_v56 = vmul.f32 %v907_v41, %v895_v51  ;;  %v919_v57 = vmul.f32 %v911_v42, %v899_v55 }
 0x17d   : > { %v887_v58 = vpop.permute.xlu1 %886 }
 0x17e   : > { %v879_v59 = vpop.permute.xlu0 %878  ;;  %1194 = vmatprep.subr.mxu0 %v919_v57 }
 0x17f   : > { %v894_v61 = vsel %vm892_vm4, %v879_v59, %v887_v58  ;;  %v898_v62 = vsel %vm892_vm4, %v887_v58, %v879_v59  ;;  %1195 = vmatpush2.msra.mxu0 %v918_v56  ;;  %v956_v58 = vld [vmem:[#allocation10 + $0x10] ss:$8 sm:$0x3] }
 0x180   : > { %v916_v63 = vmul.f32 %v907_v41, %v894_v61  ;;  %v917_v0 = vmul.f32 %v911_v42, %v898_v62 }
 0x181   : > { %v885_v2 = vpop.permute.xlu1 %884 }
 0x182   : > { %v877_v3 = vpop.permute.xlu0 %876  ;;  %1196 = vmatprep.subr.mxu0 %v917_v0 }
 0x183   : > { %v893_v4 = vsel %vm892_vm4, %v877_v3, %v885_v2  ;;  %v897_v5 = vsel %vm892_vm4, %v885_v2, %v877_v3  ;;  %1197 = vmatpush2.msra.mxu0 %v916_v63  ;;  %v961_v2 = vrot.slane %v956_v58, %v2996_v53  ;;  %v965_v3 = vrot.slane %v956_v58, %v2998_v54  ;;  %v1067_v53 = vld [vmem:[#allocation4 + $0x250] sm:$0xff]  ;;  %v1008_v58 = vld [vmem:[#allocation8 + $0xc0] sm:$0xff] }
 0x184   : > { %v914_v6 = vmul.f32 %v907_v41, %v893_v4  ;;  %v915_v7 = vmul.f32 %v911_v42, %v897_v5  ;;  %v1071_v4 = vld [vmem:[#allocation4 + $0x28] sm:$0xff] }
 0x185   : > { %v837_v10 = vpop.permute.xlu1 %836 }
 0x186   : > { %v829_v11 = vpop.permute.xlu0 %828  ;;  %1198 = vmatprep.subr.mxu0 %v915_v7  ;;  %v1070_v7 = vld [vmem:[#allocation4 + $0x258] sm:$0xff] }
 0x187   : > { %v842_v12 = vsel %vm838_vm5, %v829_v11, %v837_v10  ;;  %v846_v13 = vsel %vm838_vm5, %v837_v10, %v829_v11  ;;  %1199 = vmatpush2.msra.mxu0 %v914_v6  ;;  %v1069_v10 = vld [vmem:[#allocation4 + $0x88] sm:$0xff] }
 0x188   : > { %v866_v14 = vmul.f32 %v853_v8, %v842_v12  ;;  %v867_v15 = vmul.f32 %v857_v9, %v846_v13  ;;  %v1068_v13 = vld [vmem:[#allocation4 + $0x90] sm:$0xff] }
 0x189   : > { %v835_v16 = vpop.permute.xlu1 %834 }
 0x18a   : > { %v827_v17 = vpop.permute.xlu0 %826  ;;  %1200 = vmatprep.subr.mxu0 %v867_v15  ;;  %v1066_v15 = vld [vmem:[#allocation4 + $0x198] sm:$0xff] }
 0x18b   : > { %v841_v18 = vsel %vm838_vm5, %v827_v17, %v835_v16  ;;  %v845_v19 = vsel %vm838_vm5, %v835_v16, %v827_v17  ;;  %1201 = vmatpush2.msra.mxu0 %v866_v14 }
 0x18c   : > { %v864_v20 = vmul.f32 %v853_v8, %v841_v18  ;;  %v865_v21 = vmul.f32 %v857_v9, %v845_v19  ;;  %v1065_v18 = vld [vmem:[#allocation4 + $0x220] sm:$0xff] }
 0x18d   : > { %v833_v22 = vpop.permute.xlu1 %832 }
 0x18e   : > { %v825_v23 = vpop.permute.xlu0 %824  ;;  %1202 = vmatprep.subr.mxu0 %v865_v21  ;;  %v1064_v21 = vld [vmem:[#allocation4 + $0x2d8] sm:$0xff] }
 0x18f   : > { %v840_v24 = vsel %vm838_vm5, %v825_v23, %v833_v22  ;;  %v844_v25 = vsel %vm838_vm5, %v833_v22, %v825_v23  ;;  %1203 = vmatpush2.msra.mxu0 %v864_v20  ;;  %v984_v22 = vld [vmem:[#allocation8] sm:$0xff] }
 0x190   : > { %v862_v26 = vmul.f32 %v853_v8, %v840_v24  ;;  %v863_v27 = vmul.f32 %v857_v9, %v844_v25  ;;  %v988_v24 = vld [vmem:[#allocation8 + $0x20] sm:$0xff] }
 0x191   : > { %v831_v29 = vpop.permute.xlu1 %830 }
 0x192   : > { %v823_v30 = vpop.permute.xlu0 %822  ;;  %1204 = vmatprep.subr.mxu0 %v863_v27 }
 0x193   : > { %v839_v31 = vsel %vm838_vm5, %v823_v30, %v831_v29  ;;  %v843_v32 = vsel %vm838_vm5, %v831_v29, %v823_v30  ;;  %1205 = vmatpush2.msra.mxu0 %v862_v26  ;;  %v987_v30 = vld [vmem:[#allocation8 + $0x18] sm:$0xff] }
 0x194   : > { %v860_v33 = vmul.f32 %v853_v8, %v839_v31  ;;  %v861_v34 = vmul.f32 %v857_v9, %v843_v32  ;;  %v991_v32 = vld [vmem:[#allocation8 + $0x38] sm:$0xff] }
 0x195   : > { %v783_v37 = vpop.permute.xlu1 %782 }
 0x196   : > { %v775_v38 = vpop.permute.xlu0 %774  ;;  %1206 = vmatprep.subr.mxu0 %v861_v34 }
 0x197   : > { %v788_v39 = vsel %vm784_vm6, %v775_v38, %v783_v37  ;;  %v792_v40 = vsel %vm784_vm6, %v783_v37, %v775_v38  ;;  %1207 = vmatpush2.msra.mxu0 %v860_v33  ;;  %v990_v38 = vld [vmem:[#allocation8 + $0x30] sm:$0xff] }
 0x198   : > { %v812_v41 = vmul.f32 %v799_v35, %v788_v39  ;;  %v813_v42 = vmul.f32 %v803_v36, %v792_v40  ;;  %v986_v39 = vld [vmem:[#allocation8 + $0x10] sm:$0xff] }
 0x199   : > { %v781_v43 = vpop.permute.xlu1 %780  ;;  %v994_v40 = vld [vmem:[#allocation8 + $0x50] sm:$0xff] }
 0x19a   : > { %v773_v44 = vpop.permute.xlu0 %772  ;;  %1208 = vmatprep.subr.mxu0 %v813_v42  ;;  %v989_v42 = vld [vmem:[#allocation8 + $0x28] sm:$0xff] }
 0x19b   : > { %v787_v45 = vsel %vm784_vm6, %v773_v44, %v781_v43  ;;  %v791_v46 = vsel %vm784_vm6, %v781_v43, %v773_v44  ;;  %1209 = vmatpush2.msra.mxu0 %v812_v41  ;;  %v993_v41 = vld [vmem:[#allocation8 + $0x48] sm:$0xff]  ;;  %v992_v44 = vld [vmem:[#allocation8 + $0x40] sm:$0xff] }
 0x19c   : > { %v810_v47 = vmul.f32 %v799_v35, %v787_v45  ;;  %v811_v48 = vmul.f32 %v803_v36, %v791_v46  ;;  %v997_v43 = vld [vmem:[#allocation8 + $0x68] sm:$0xff]  ;;  %v1000_v45 = vld [vmem:[#allocation8 + $0x80] sm:$0xff]  ;;  %v999_v46 = vld [vmem:[#allocation8 + $0x78] sm:$0xff] }
 0x19d   : > { %v779_v49 = vpop.permute.xlu1 %778 }
 0x19e   : > { %v771_v50 = vpop.permute.xlu0 %770  ;;  %1210 = vmatprep.subr.mxu0 %v811_v48  ;;  %v1003_v48 = vld [vmem:[#allocation8 + $0x98] sm:$0xff] }
 0x19f   : > { %v786_v51 = vsel %vm784_vm6, %v771_v50, %v779_v49  ;;  %v790_v55 = vsel %vm784_vm6, %v779_v49, %v771_v50  ;;  %1211 = vmatpush2.msra.mxu0 %v810_v47  ;;  %v995_v47 = vld [vmem:[#allocation8 + $0x58] sm:$0xff]  ;;  %v1002_v49 = vld [vmem:[#allocation8 + $0x90] sm:$0xff] }
 0x1a0   : > { %v808_v56 = vmul.f32 %v799_v35, %v786_v51  ;;  %v809_v57 = vmul.f32 %v803_v36, %v790_v55  ;;  %v998_v50 = vld [vmem:[#allocation8 + $0x70] sm:$0xff]  ;;  %v1005_v55 = vld [vmem:[#allocation8 + $0xa8] sm:$0xff] }
 0x1a1   : > { %v777_v59 = vpop.permute.xlu1 %776  ;;  %v1006_v51 = vld [vmem:[#allocation8 + $0xb0] sm:$0xff] }
 0x1a2   : > { %v769_v61 = vpop.permute.xlu0 %768  ;;  %1212 = vmatprep.subr.mxu0 %v809_v57  ;;  %v1009_v57 = vld [vmem:[#allocation8 + $0xc8] sm:$0xff] }
 0x1a3   : > { %v785_v62 = vsel %vm784_vm6, %v769_v61, %v777_v59  ;;  %v789_v63 = vsel %vm784_vm6, %v777_v59, %v769_v61  ;;  %1213 = vmatpush2.msra.mxu0 %v808_v56  ;;  %v1001_v56 = vld [vmem:[#allocation8 + $0x88] sm:$0xff]  ;;  %v1004_v59 = vld [vmem:[#allocation8 + $0xa0] sm:$0xff] }
 0x1a4   : > { %v806_v0 = vmul.f32 %v799_v35, %v785_v62  ;;  %v807_v1 = vmul.f32 %v803_v36, %v789_v63  ;;  %v1012_v61 = vld [vmem:[#allocation8 + $0xe0] sm:$0xff]  ;;  %v1011_v62 = vld [vmem:[#allocation8 + $0xd8] sm:$0xff] }
 0x1a5   : > { %v945_v5 = vpop.permute.xlu1 %944  ;;  %v1007_v63 = vld [vmem:[#allocation8 + $0xb8] sm:$0xff] }
 0x1a6   : > { %v937_v6 = vpop.permute.xlu0 %936  ;;  %1214 = vmatprep.subr.mxu0 %v807_v1  ;;  %v1014_v1 = vld [vmem:[#allocation8 + $0xf0] sm:$0xff] }
 0x1a7   : > { %v950_v8 = vsel %vm946_vm7, %v937_v6, %v945_v5  ;;  %v954_v9 = vsel %vm946_vm7, %v945_v5, %v937_v6  ;;  %1215 = vmatpush2.msra.mxu0 %v806_v0  ;;  %v1015_v0 = vld [vmem:[#allocation8 + $0xf8] sm:$0xff]  ;;  %v1013_v5 = vld [vmem:[#allocation8 + $0xe8] sm:$0xff] }
 0x1a8   : > { %v974_v11 = vmul.f32 %v961_v2, %v950_v8  ;;  %v975_v12 = vmul.f32 %v965_v3, %v954_v9  ;;  %1216 = vmatprep.subr.mxu0 %v1071_v4  ;;  %v1017_v4 = vld [vmem:[#allocation8 + $0x108] sm:$0xff]  ;;  %v1016_v8 = vld [vmem:[#allocation8 + $0x100] sm:$0xff] }
 0x1a9   : > { %1217 = vmatpush2.msra.mxu0 %v1070_v7  ;;  %v943_v54 = vpop.permute.xlu1 %942  ;;  %v1021_v6 = vld [vmem:[#allocation8 + $0x128] sm:$0xff]  ;;  %v1020_v7 = vld [vmem:[#allocation8 + $0x120] sm:$0xff] }
 0x1aa   : > { %v935_v14 = vpop.permute.xlu0 %934  ;;  %1345 = vmatprep.subr.mxu1 %v975_v12  ;;  %1218 = vmatprep.subr.mxu0 %v1069_v10  ;;  %v1024_v9 = vld [vmem:[#allocation8 + $0x140] sm:$0xff]  ;;  %v1023_v10 = vld [vmem:[#allocation8 + $0x138] sm:$0xff] }
 0x1ab   : > { %v949_v16 = vsel %vm946_vm7, %v935_v14, %v943_v54  ;;  %v953_v17 = vsel %vm946_vm7, %v943_v54, %v935_v14  ;;  %1346 = vmatpush1.msra.mxu1 %v974_v11  ;;  %1219 = vmatpush2.msra.mxu0 %v1068_v13  ;;  %v1019_v11 = vld [vmem:[#allocation8 + $0x118] sm:$0xff]  ;;  %v1026_v13 = vld [vmem:[#allocation8 + $0x150] sm:$0xff]  ;;  %v1029_v14 = vld [vmem:[#allocation8 + $0x168] sm:$0xff] }
 0x1ac   : > { %v972_v19 = vmul.f32 %v961_v2, %v949_v16  ;;  %v973_v20 = vmul.f32 %v965_v3, %v953_v17  ;;  %1220 = vmatprep.subr.mxu0 %v1067_v53  ;;  %v1027_v12 = vld [vmem:[#allocation8 + $0x158] sm:$0xff]  ;;  %v1022_v53 = vld [vmem:[#allocation8 + $0x130] sm:$0xff]  ;;  %v1028_v16 = vld [vmem:[#allocation8 + $0x160] sm:$0xff] }
 0x1ad   : > { %1221 = vmatpush2.msra.mxu0 %v1066_v15  ;;  %v941_v23 = vpop.permute.xlu1 %940  ;;  %v1030_v54 = vld [vmem:[#allocation8 + $0x170] sm:$0xff]  ;;  %v1025_v15 = vld [vmem:[#allocation8 + $0x148] sm:$0xff]  ;;  %v1031_v17 = vld [vmem:[#allocation8 + $0x178] sm:$0xff] }
 0x1ae   : > { %1347 = vmatprep.subr.mxu1 %v973_v20  ;;  %1222 = vmatprep.subr.mxu0 %v1065_v18  ;;  %v933_v25 = vpop.permute.xlu0 %932 }
 0x1af   : > { %1348 = vmatpush1.msra.mxu1 %v972_v19  ;;  %1223 = vmatpush2.msra.mxu0 %v1064_v21  ;;  %v948_v26 = vsel %vm946_vm7, %v933_v25, %v941_v23  ;;  %v952_v27 = vsel %vm946_vm7, %v941_v23, %v933_v25  ;;  %v1128_v21 = vld [vmem:[%s2858_s9] sm:$0xff]  ;;  %v1130_v25 = vld [vmem:[%s2858_s9 + $0x10] sm:$0xff] }
 0x1b0   : > { %1225 = vmatmul.mubr.f32.vlgmr.msra.gmra.mxu0 %v984_v22  ;;  %v970_v28 = vmul.f32 %v961_v2, %v948_v26  ;;  %v971_v29 = vmul.f32 %v965_v3, %v952_v27  ;;  %v1129_v27 = vld [vmem:[%s2858_s9 + $0x8] sm:$0xff] }
 0x1b1   : > { %1230 = vmatprep.mubr.f32.mxu0 %v988_v24  ;;  %v939_v31 = vpop.permute.xlu1 %938 }
 0x1b2   : > { %v931_v33 = vpop.permute.xlu0 %930  ;;  %1349 = vmatprep.subr.mxu1 %v971_v29 }
 0x1b3   : > { %v947_v34 = vsel %vm946_vm7, %v931_v33, %v939_v31  ;;  %v951_v35 = vsel %vm946_vm7, %v939_v31, %v931_v33  ;;  %1350 = vmatpush1.msra.mxu1 %v970_v28  ;;  %v1132_v33 = vld [vmem:[%s2858_s9 + $0x20] sm:$0xff] }
 0x1b4   : > { %1231 = vmatmul.mubr.f32.gmra.mxu0 %v987_v30  ;;  %v968_v36 = vmul.f32 %v961_v2, %v947_v34  ;;  %v969_v37 = vmul.f32 %v965_v3, %v951_v35  ;;  %v1010_v2 = vld [vmem:[#allocation8 + $0xd0] sm:$0xff]  ;;  %v1131_v35 = vld [vmem:[%s2858_s9 + $0x18] sm:$0xff] }
 0x1b5   : > { %1236 = vmatprep.mubr.f32.mxu0 %v991_v32  ;;  %v1018_v3 = vld [vmem:[#allocation8 + $0x110] sm:$0xff] }
 0x1b6   : > { %1351 = vmatprep.subr.mxu1 %v969_v37 }
 0x1b7   : > { %1352 = vmatpush1.msra.mxu1 %v968_v36 }
 0x1b8   : > { %1237 = vmatmul.mubr.f32.gmra.mxu0 %v990_v38  ;;  %1386 = vmatmul.mubr.f32.vlgmr.msra.gmra.mxu1 %v986_v39 }
 0x1b9   : > { %1242 = vmatprep.mubr.f32.mxu0 %v994_v40  ;;  %1391 = vmatprep.mubr.f32.mxu1 %v2586_v60 }
 0x1bc   : > { %1243 = vmatmul.mubr.f32.gmra.mxu0 %v993_v41  ;;  %1392 = vmatmul.mubr.f32.gmra.mxu1 %v989_v42  ;;  %v1133_v41 = vld [vmem:[%s2858_s9 + $0x28] sm:$0xff]  ;;  %v1134_v42 = vld [vmem:[%s2858_s9 + $0x30] sm:$0xff] }
 0x1bd   : > { %1248 = vmatprep.mubr.f32.mxu0 %v997_v43  ;;  %1397 = vmatprep.mubr.f32.mxu1 %v2586_v60 }
 0x1c0   : > { %1249 = vmatmul.mubr.f32.gmra.mxu0 %v996_v52  ;;  %1398 = vmatmul.mubr.f32.gmra.mxu1 %v992_v44 }
 0x1c1   : > { %1254 = vmatprep.mubr.f32.mxu0 %v1000_v45  ;;  %1403 = vmatprep.mubr.f32.mxu1 %v2586_v60 }
 0x1c4   : > { %1255 = vmatmul.mubr.f32.gmra.mxu0 %v999_v46  ;;  %1404 = vmatmul.mubr.f32.gmra.mxu1 %v995_v47 }
 0x1c5   : > { %1260 = vmatprep.mubr.f32.mxu0 %v1003_v48  ;;  %1409 = vmatprep.mubr.f32.mxu1 %v2586_v60 }
 0x1c8   : > { %1261 = vmatmul.mubr.f32.gmra.mxu0 %v1002_v49  ;;  %1410 = vmatmul.mubr.f32.gmra.mxu1 %v998_v50 }
 0x1c9   : > { %1266 = vmatprep.mubr.f32.mxu0 %v1006_v51  ;;  %1415 = vmatprep.mubr.f32.mxu1 %v2586_v60 }
 0x1cc   : > { %1267 = vmatmul.mubr.f32.gmra.mxu0 %v1005_v55  ;;  %1416 = vmatmul.mubr.f32.gmra.mxu1 %v1001_v56  ;;  %v1136_v55 = vld [vmem:[%s2858_s9 + $0x40] sm:$0xff] }
 0x1cd   : > { %1272 = vmatprep.mubr.f32.mxu0 %v1009_v57  ;;  %1421 = vmatprep.mubr.f32.mxu1 %v2586_v60 }
 0x1d0   : > { %1273 = vmatmul.mubr.f32.gmra.mxu0 %v1008_v58  ;;  %1422 = vmatmul.mubr.f32.gmra.mxu1 %v1004_v59 }
 0x1d1   : > { %1278 = vmatprep.mubr.f32.mxu0 %v1012_v61  ;;  %1427 = vmatprep.mubr.f32.mxu1 %v2586_v60 }
 0x1d4   : > { %1279 = vmatmul.mubr.f32.gmra.mxu0 %v1011_v62  ;;  %1428 = vmatmul.mubr.f32.gmra.mxu1 %v1007_v63 }
 0x1d5   : > { %1284 = vmatprep.mubr.f32.mxu0 %v1015_v0  ;;  %1433 = vmatprep.mubr.f32.mxu1 %v2586_v60 }
 0x1d8   : > { %1285 = vmatmul.mubr.f32.gmra.mxu0 %v1014_v1  ;;  %1434 = vmatmul.mubr.f32.gmra.mxu1 %v1010_v2  ;;  %v1137_v2 = vld [vmem:[%s2858_s9 + $0x48] sm:$0xff] }
 0x1d9   : > { %1290 = vmatprep.mubr.f32.mxu0 %v1018_v3  ;;  %1439 = vmatprep.mubr.f32.mxu1 %v2586_v60 }
 0x1dc   : > { %1291 = vmatmul.mubr.f32.gmra.mxu0 %v1017_v4  ;;  %1440 = vmatmul.mubr.f32.gmra.mxu1 %v1013_v5  ;;  %v1138_v4 = vld [vmem:[%s2858_s9 + $0x50] sm:$0xff] }
 0x1dd   : > { %1296 = vmatprep.mubr.f32.mxu0 %v1021_v6  ;;  %1445 = vmatprep.mubr.f32.mxu1 %v2586_v60 }
 0x1e0   : > { %1297 = vmatmul.mubr.f32.gmra.mxu0 %v1020_v7  ;;  %1446 = vmatmul.mubr.f32.gmra.mxu1 %v1016_v8 }
 0x1e1   : > { %1302 = vmatprep.mubr.f32.mxu0 %v1024_v9  ;;  %1451 = vmatprep.mubr.f32.mxu1 %v2586_v60  ;;  %v1135_v9 = vld [vmem:[%s2858_s9 + $0x38] sm:$0xff] }
 0x1e4   : > { %1303 = vmatmul.mubr.f32.gmra.mxu0 %v1023_v10  ;;  %1452 = vmatmul.mubr.f32.gmra.mxu1 %v1019_v11 }
 0x1e5   : > { %1308 = vmatprep.mubr.f32.mxu0 %v1027_v12  ;;  %1457 = vmatprep.mubr.f32.mxu1 %v2586_v60 }
 0x1e8   : > { %1309 = vmatmul.mubr.f32.gmra.mxu0 %v1026_v13  ;;  %1458 = vmatmul.mubr.f32.gmra.mxu1 %v1022_v53 }
 0x1e9   : > { %1314 = vmatprep.mubr.f32.mxu0 %v1030_v54  ;;  %1463 = vmatprep.mubr.f32.mxu1 %v2586_v60  ;;  %v1139_v54 = vld [vmem:[%s2858_s9 + $0x58] sm:$0xff] }
 0x1ec   : > { %1315 = vmatmul.mubr.f32.gmra.mxu0 %v1029_v14  ;;  %1464 = vmatmul.mubr.f32.gmra.mxu1 %v1025_v15  ;;  %v1140_v15 = vld [vmem:[%s2858_s9 + $0x60] sm:$0xff] }
 0x1ed   : > { %1469 = vmatprep.mubr.f32.mxu1 %v2586_v60 }
 0x1f0   : > { %1470 = vmatmul.mubr.f32.gmra.mxu1 %v1028_v16 }
 0x1f1   : > { %1475 = vmatprep.mubr.f32.mxu1 %v2586_v60 }
 0x1f4   : > { %1476 = vmatmul.mubr.f32.gmra.mxu1 %v1031_v17 }
 0x270   : > { %v1226_v18 = vpop.f32.mrf.mxu0 }
 0x271   : > { %v1227_v24 = vadd.f32 %v1226_v18, %v1128_v21 }
 0x272   : > { %v1228_v19 = vpop.f32.mrf.mxu0 }
 0x273   : > { %v1229_v31 = vadd.f32 %v1228_v19, %v1129_v27 }
 0x274   : > { %v1232_v20 = vpop.f32.mrf.mxu0 }
 0x275   : > { %v1233_v30 = vadd.f32 %v1232_v20, %v1130_v25 }
 0x276   : > { %v1234_v22 = vpop.f32.mrf.mxu0 }
 0x277   : > { %v1235_v44 = vadd.f32 %v1234_v22, %v1131_v35 }
 0x278   : > { %v1238_v23 = vpop.f32.mrf.mxu0  ;;  %v1387_v26 = vpop.f32.mrf.mxu1 }
 0x279   : > { %v1388_v32 = vadd.f32 %v1387_v26, %v1227_v24  ;;  %v1239_v39 = vadd.f32 %v1238_v23, %v1132_v33 }
 0x27a   : > { %v1240_v28 = vpop.f32.mrf.mxu0  ;;  %v1389_v29 = vpop.f32.mrf.mxu1 }
 0x27b   : > { %v1390_v37 = vadd.f32 %v1389_v29, %v1229_v31  ;;  %v1955_v52 = vmul.f32 -1.442695, %v1388_v32  ;;  %v1241_v48 = vadd.f32 %v1240_v28, %v1133_v41 }
 0x27c   : > { %v1244_v60 = vpop.f32.mrf.mxu0  ;;  %v1393_v34 = vpop.f32.mrf.mxu1 }
 0x27d   : > { %v1394_v40 = vadd.f32 %v1393_v34, %v1233_v30  ;;  %v1956_v47 = vmul.f32 -1.442695, %v1390_v37  ;;  %v1245_v50 = vadd.f32 %v1244_v60, %v1134_v42  ;;  %2144 = vpow2.f32 %v1955_v52  ;;  %v1141_v30 = vld [vmem:[%s2858_s9 + $0x68] sm:$0xff] }
 0x27e   : > { %v1246_v36 = vpop.f32.mrf.mxu0  ;;  %v1395_v38 = vpop.f32.mrf.mxu1 }
 0x27f   : > { %v1396_v49 = vadd.f32 %v1395_v38, %v1235_v44  ;;  %v1957_v56 = vmul.f32 -1.442695, %v1394_v40  ;;  %2146 = vpow2.f32 %v1956_v47  ;;  %v1247_v18 = vadd.f32 %v1246_v36, %v1135_v9  ;;  %v1142_v36 = vld [vmem:[%s2858_s9 + $0x70] sm:$0xff]  ;;  %v1144_v47 = vld [vmem:[%s2858_s9 + $0x80] sm:$0xff] }
 0x280   : > { %v1250_v43 = vpop.f32.mrf.mxu0  ;;  %v1399_v45 = vpop.f32.mrf.mxu1 }
 0x281   : > { %v1400_v57 = vadd.f32 %v1399_v45, %v1239_v39  ;;  %v1251_v62 = vadd.f32 %v1250_v43, %v1136_v55  ;;  %v1958_v0 = vmul.f32 -1.442695, %v1396_v49  ;;  %2148 = vpow2.f32 %v1957_v56 }
 0x282   : > { %v1252_v46 = vpop.f32.mrf.mxu0  ;;  %v1401_v51 = vpop.f32.mrf.mxu1 }
 0x283   : > { %v1402_v59 = vadd.f32 %v1401_v51, %v1241_v48  ;;  %v1959_v5 = vmul.f32 -1.442695, %v1400_v57  ;;  %v1253_v10 = vadd.f32 %v1252_v46, %v1137_v2  ;;  %2150 = vpow2.f32 %v1958_v0  ;;  %v1145_v2 = vld [vmem:[%s2858_s9 + $0x88] sm:$0xff] }
 0x284   : > { %v1256_v58 = vpop.f32.mrf.mxu0  ;;  %v1405_v61 = vpop.f32.mrf.mxu1 }
 0x285   : > { %v1406_v1 = vadd.f32 %v1405_v61, %v1245_v50  ;;  %v1960_v7 = vmul.f32 -1.442695, %v1402_v59  ;;  %v1257_v11 = vadd.f32 %v1256_v58, %v1138_v4  ;;  %2152 = vpow2.f32 %v1959_v5  ;;  %v1143_v50 = vld [vmem:[%s2858_s9 + $0x78] sm:$0xff] }
 0x286   : > { %v1258_v63 = vpop.f32.mrf.mxu0  ;;  %v1407_v3 = vpop.f32.mrf.mxu1 }
 0x287   : > { %v1961_v53 = vmul.f32 -1.442695, %v1406_v1  ;;  %2154 = vpow2.f32 %v1960_v7  ;;  %v1259_v21 = vadd.f32 %v1258_v63, %v1139_v54  ;;  %v1408_v25 = vadd.f32 %v1407_v3, %v1247_v18  ;;  %v1146_v3 = vld [vmem:[%s2858_s9 + $0x90] sm:$0xff]  ;;  %v1147_v54 = vld [vmem:[%s2858_s9 + $0x98] sm:$0xff] }
 0x288   : > { %v1262_v6 = vpop.f32.mrf.mxu0  ;;  %v1411_v8 = vpop.f32.mrf.mxu1 }
 0x289   : > { %v1412_v12 = vadd.f32 %v1411_v8, %v1251_v62  ;;  %v1263_v22 = vadd.f32 %v1262_v6, %v1140_v15  ;;  %2156 = vpow2.f32 %v1961_v53  ;;  %v1962_v35 = vmul.f32 -1.442695, %v1408_v25 }
 0x28a   : > { %v1264_v13 = vpop.f32.mrf.mxu0  ;;  %v1413_v14 = vpop.f32.mrf.mxu1 }
 0x28b   : > { %v1414_v16 = vadd.f32 %v1413_v14, %v1253_v10  ;;  %v1963_v20 = vmul.f32 -1.442695, %v1412_v12  ;;  %v2145_v31 = vpop.eup %2144  ;;  %v1265_v39 = vadd.f32 %v1264_v13, %v1141_v30 }
 0x28c   : > { %v1268_v17 = vpop.f32.mrf.mxu0  ;;  %v1417_v19 = vpop.f32.mrf.mxu1  ;;  %v1506_v43 = vadd.f32 1.0, %v2145_v31 }
 0x28d   : > { %v1418_v23 = vadd.f32 %v1417_v19, %v1257_v11  ;;  %v1964_v27 = vmul.f32 -1.442695, %v1414_v16  ;;  %2158 = vpow2.f32 %v1963_v20  ;;  %v2147_v38 = vpop.eup %2146  ;;  %v1269_v44 = vadd.f32 %v1268_v17, %v1142_v36  ;;  %v1148_v16 = vld [vmem:[%s2858_s9 + $0xa0] sm:$0xff] }
 0x28e   : > { %v1270_v24 = vpop.f32.mrf.mxu0  ;;  %v1419_v26 = vpop.f32.mrf.mxu1  ;;  %v1507_v49 = vadd.f32 1.0, %v2147_v38  ;;  %v1152_v38 = vld [vmem:[%s2858_s9 + $0xc0] sm:$0xff] }
 0x28f   : > { %v1420_v28 = vadd.f32 %v1419_v26, %v1259_v21  ;;  %v1965_v32 = vmul.f32 -1.442695, %v1418_v23  ;;  %2160 = vpow2.f32 %v1964_v27  ;;  %v2149_v42 = vpop.eup %2148  ;;  %v1271_v63 = vadd.f32 %v1270_v24, %v1143_v50 }
 0x290   : > { %v1274_v29 = vpop.f32.mrf.mxu0  ;;  %v1423_v60 = vpop.f32.mrf.mxu1  ;;  %v1508_v56 = vadd.f32 1.0, %v2149_v42  ;;  %v1150_v42 = vld [vmem:[%s2858_s9 + $0xb0] sm:$0xff] }
 0x291   : > { %v1424_v33 = vadd.f32 %v1423_v60, %v1263_v22  ;;  %v1966_v40 = vmul.f32 -1.442695, %v1420_v28  ;;  %2162 = vpow2.f32 %v1965_v32  ;;  %v2151_v55 = vpop.eup %2150  ;;  %v1275_v59 = vadd.f32 %v1274_v29, %v1144_v47 }
 0x292   : > { %v1276_v34 = vpop.f32.mrf.mxu0  ;;  %v1425_v37 = vpop.f32.mrf.mxu1  ;;  %2164 = vpow2.f32 %v1962_v35  ;;  %v1509_v5 = vadd.f32 1.0, %v2151_v55 }
 0x293   : > { %v1967_v45 = vmul.f32 -1.442695, %v1424_v33  ;;  %v1426_v46 = vadd.f32 %v1425_v37, %v1265_v39  ;;  %2166 = vpow2.f32 %v1966_v40  ;;  %v2153_v58 = vpop.eup %2152  ;;  %v1277_v12 = vadd.f32 %v1276_v34, %v1145_v2  ;;  %v1149_v33 = vld [vmem:[%s2858_s9 + $0xa8] sm:$0xff] }
 0x294   : > { %v1280_v41 = vpop.f32.mrf.mxu0  ;;  %v1429_v52 = vpop.f32.mrf.mxu1  ;;  %2168 = vrcp.f32 %v1506_v43  ;;  %v1510_v8 = vadd.f32 1.0, %v2153_v58 }
 0x295   : > { %v2155_v62 = vpop.eup %2154  ;;  %2170 = vpow2.f32 %v1967_v45  ;;  %v1968_v0 = vmul.f32 -1.442695, %v1426_v46  ;;  %v1430_v1 = vadd.f32 %v1429_v52, %v1269_v44  ;;  %v1281_v13 = vadd.f32 %v1280_v41, %v1146_v3 }
 0x296   : > { %v1282_v48 = vpop.f32.mrf.mxu0  ;;  %v1431_v51 = vpop.f32.mrf.mxu1  ;;  %2172 = vrcp.f32 %v1507_v49  ;;  %v1511_v11 = vadd.f32 1.0, %v2155_v62 }
 0x297   : > { %v2157_v7 = vpop.eup %2156  ;;  %2174 = vrcp.f32 %v1508_v56  ;;  %v1432_v9 = vadd.f32 %v1431_v51, %v1271_v63  ;;  %v1969_v15 = vmul.f32 -1.442695, %v1430_v1  ;;  %v1283_v23 = vadd.f32 %v1282_v48, %v1147_v54 }
 0x298   : > { %v1286_v57 = vpop.f32.mrf.mxu0  ;;  %v1435_v61 = vpop.f32.mrf.mxu1  ;;  %2176 = vpow2.f32 %v1968_v0  ;;  %v1512_v19 = vadd.f32 1.0, %v2157_v7 }
 0x299   : > { %v1436_v53 = vadd.f32 %v1435_v61, %v1275_v59  ;;  %2178 = vrcp.f32 %v1509_v5  ;;  %v1970_v22 = vmul.f32 -1.442695, %v1432_v9  ;;  %v1287_v27 = vadd.f32 %v1286_v57, %v1148_v16  ;;  %v1153_v59 = vld [vmem:[%s2858_s9 + $0xc8] sm:$0xff]  ;;  %v1154_v61 = vld [vmem:[%s2858_s9 + $0xd0] sm:$0xff] }
 0x29a   : > { %v1288_v4 = vpop.f32.mrf.mxu0  ;;  %v1437_v6 = vpop.f32.mrf.mxu1  ;;  %2180 = vrcp.f32 %v1510_v8 }
 0x29b   : > { %v2159_v18 = vpop.eup %2158  ;;  %v1438_v20 = vadd.f32 %v1437_v6, %v1277_v12  ;;  %2182 = vrcp.f32 %v1511_v11  ;;  %v1971_v26 = vmul.f32 -1.442695, %v1436_v53  ;;  %v1289_v46 = vadd.f32 %v1288_v4, %v1149_v33  ;;  %v1151_v4 = vld [vmem:[%s2858_s9 + $0xb8] sm:$0xff] }
 0x29c   : > { %v1292_v10 = vpop.f32.mrf.mxu0  ;;  %v1441_v14 = vpop.f32.mrf.mxu1  ;;  %v1554_v30 = vadd.f32 1.0, %v2159_v18  ;;  %2184 = vpow2.f32 %v1969_v15  ;;  %v1155_v12 = vld [vmem:[%s2858_s9 + $0xd8] sm:$0xff] }
 0x29d   : > { %v2161_v25 = vpop.eup %2160  ;;  %v1442_v28 = vadd.f32 %v1441_v14, %v1281_v13  ;;  %2186 = vrcp.f32 %v1512_v19  ;;  %v1972_v32 = vmul.f32 -1.442695, %v1438_v20  ;;  %v1293_v57 = vadd.f32 %v1292_v10, %v1150_v42  ;;  %v1156_v13 = vld [vmem:[%s2858_s9 + $0xe0] sm:$0xff]  ;;  %v1159_v42 = vld [vmem:[%s2858_s9 + $0xf8] sm:$0xff] }
 0x29e   : > { %v3201_v17 = vpop.f32.mrf.mxu0  ;;  %v1443_v21 = vpop.f32.mrf.mxu1  ;;  %v1555_v37 = vadd.f32 1.0, %v2161_v25  ;;  %2188 = vpow2.f32 %v1970_v22 }
 0x29f   : > { %v2163_v31 = vpop.eup %2162  ;;  %v1444_v34 = vadd.f32 %v1443_v21, %v1283_v23  ;;  %2190 = vpow2.f32 %v1971_v26  ;;  %v1973_v41 = vmul.f32 -1.442695, %v1442_v28  ;;  %v1295_v19 = vadd.f32 %v3201_v17, %v1151_v4  ;;  %v1157_v28 = vld [vmem:[%s2858_s9 + $0xe8] sm:$0xff]  ;;  %v1635_v4 = vld [vmem:[#allocation3 + $0x18] sm:$0xff] }
 0x2a0   : > { %v1298_v24 = vpop.f32.mrf.mxu0  ;;  %v1447_v29 = vpop.f32.mrf.mxu1  ;;  %2192 = vrcp.f32 %v1554_v30  ;;  %v1556_v45 = vadd.f32 1.0, %v2163_v31 }
 0x2a1   : > { %v3204_v36 = vpop.eup %2164  ;;  %v1448_v43 = vadd.f32 %v1447_v29, %v1287_v27  ;;  %2194 = vpow2.f32 %v1972_v32  ;;  %v1974_v49 = vmul.f32 -1.442695, %v1444_v34  ;;  %v1299_v50 = vadd.f32 %v1298_v24, %v1152_v38  ;;  %v1158_v29 = vld [vmem:[%s2858_s9 + $0xf0] sm:$0xff]  ;;  %s1989_s9 = sshll.u32 %s3438_s19, 10 }
 0x2a2   : > { %v1300_v60 = vpop.f32.mrf.mxu0  ;;  %v1449_v35 = vpop.f32.mrf.mxu1  ;;  %2196 = vrcp.f32 %v1555_v37  ;;  %s3253_s2 = scalar_lea.hbm %s3440_s20, %s1989_s9 }
 0x2a3   : > { %v2167_v40 = vpop.eup %2166  ;;  %v1450_v58 = vadd.f32 %v1449_v35, %v1289_v46  ;;  %2198 = vpow2.f32 %v1973_v41  ;;  %v1975_v0 = vmul.f32 -1.442695, %v1448_v43  ;;  %v1301_v5 = vadd.f32 %v1300_v60, %v1153_v59 }
 0x2a4   : > { %v1304_v39 = vpop.f32.mrf.mxu0  ;;  %v1453_v52 = vpop.f32.mrf.mxu1  ;;  %v1557_v56 = vadd.f32 1.0, %v2167_v40 }
 0x2a5   : > { %v3208_v44 = vpop.eup %2168  ;;  %2200 = vrcp.f32 %v1556_v45  ;;  %v1305_v6 = vadd.f32 %v1304_v39, %v1154_v61  ;;  %v1976_v10 = vmul.f32 -1.442695, %v1450_v58  ;;  %v1454_v11 = vadd.f32 %v1453_v52, %v1293_v57 }
 0x2a6   : > { %v1306_v47 = vpop.f32.mrf.mxu0  ;;  %v2171_v48 = vpop.eup %2170  ;;  %2202 = vpow2.f32 %v1974_v49  ;;  %v1513_v58 = vadd.f32 1.0, %v3204_v36 }
 0x2a7   : > { %v1455_v51 = vpop.f32.mrf.mxu1  ;;  %v3210_v55 = vpop.eup %2172  ;;  %v1558_v2 = vadd.f32 1.0, %v2171_v48  ;;  %2204 = vrcp.f32 %v1557_v56  ;;  %v1307_v21 = vadd.f32 %v1306_v47, %v1155_v12  ;;  %v1977_v26 = vmul.f32 -1.442695, %v1454_v11 }
 0x2a8   : > { %v1310_v62 = vpop.f32.mrf.mxu0  ;;  %v3214_v63 = vpop.eup %2174  ;;  %2206 = vpow2.f32 %v1975_v0  ;;  %v1456_v27 = vadd.f32 %v1455_v51, %v1295_v19  ;;  %v1634_v0 = vld [vmem:[#allocation3] sm:$0xff] }
 0x2a9   : > { %v1459_v1 = vpop.f32.mrf.mxu1  ;;  %v2177_v3 = vpop.eup %2176  ;;  %2208 = vrcp.f32 %v1558_v2  ;;  %v1311_v22 = vadd.f32 %v1310_v62, %v1156_v13 }
 0x2aa   : > { %v1460_v7 = vadd.f32 %v1459_v1, %v1299_v50  ;;  %v3217_v9 = vpop.eup %2178  ;;  %v1312_v53 = vpop.f32.mrf.mxu0  ;;  %v1559_v18 = vadd.f32 1.0, %v2177_v3  ;;  %v1978_v41 = vmul.f32 -1.442695, %v1456_v27 }
 0x2ab   : > { %v1461_v8 = vpop.f32.mrf.mxu1  ;;  %v3221_v54 = vpop.eup %2180  ;;  %v1313_v35 = vadd.f32 %v1312_v53, %v1157_v28 }
 0x2ac   : > { %v1462_v14 = vadd.f32 %v1461_v8, %v1301_v5  ;;  %v3223_v16 = vpop.eup %2182  ;;  %2210 = vtanh.f32 %v1460_v7  ;;  %v1316_v30 = vpop.f32.mrf.mxu0 }
 0x2ad   : > { %v1465_v15 = vpop.f32.mrf.mxu1  ;;  %v2185_v20 = vpop.eup %2184  ;;  %2212 = vpow2.f32 %v1976_v10  ;;  %v1317_v37 = vadd.f32 %v1316_v30, %v1158_v29  ;;  %v1636_v10 = vld [vmem:[#allocation3 + $0x10] sm:$0xff] }
 0x2ae   : > { %v1466_v23 = vadd.f32 %v1465_v15, %v1305_v6  ;;  %v3226_v25 = vpop.eup %2186  ;;  %2214 = vtanh.f32 %v1462_v14  ;;  %v1560_v33 = vadd.f32 1.0, %v2185_v20  ;;  %v1318_v43 = vpop.f32.mrf.mxu0 }
 0x2af   : > { %v1467_v24 = vpop.f32.mrf.mxu1  ;;  %v2189_v60 = vpop.eup %2188  ;;  %2216 = vrcp.f32 %v1559_v18  ;;  %v1319_v50 = vadd.f32 %v1318_v43, %v1159_v42  ;;  %v1637_v18 = vld [vmem:[#allocation3 + $0x20] sm:$0xff] }
 0x2b0   : > { %v1468_v31 = vadd.f32 %v1467_v24, %v1307_v21  ;;  %v2191_v17 = vpop.eup %2190  ;;  %2218 = vtanh.f32 %v1466_v23  ;;  %v1561_v48 = vadd.f32 1.0, %v2189_v60  ;;  %v1638_v24 = vld [vmem:[#allocation3 + $0x28] sm:$0xff] }
 0x2b1   : > { %v1471_v32 = vpop.f32.mrf.mxu1  ;;  %v2193_v34 = vpop.eup %2192  ;;  %2220 = vpow2.f32 %v1977_v26  ;;  %v1602_v3 = vadd.f32 1.0, %v2191_v17  ;;  %v1639_v60 = vld [vmem:[#allocation3 + $0x8] sm:$0xff] }
 0x2b2   : > { %v1472_v38 = vadd.f32 %v1471_v32, %v1311_v22  ;;  %v2195_v40 = vpop.eup %2194  ;;  %2222 = vtanh.f32 %v1468_v31  ;;  %v1642_v6 = vmul.f32 %v2193_v34, %v1634_v0 }
 0x2b3   : > { %v1473_v39 = vpop.f32.mrf.mxu1  ;;  %v2197_v52 = vpop.eup %2196  ;;  %2224 = vrcp.f32 %v1560_v33  ;;  %v1603_v8 = vadd.f32 1.0, %v2195_v40 }
 0x2b4   : > { %v1474_v45 = vadd.f32 %v1473_v39, %v1313_v35  ;;  %v2199_v47 = vpop.eup %2198  ;;  %2226 = vtanh.f32 %v1472_v38  ;;  %v1643_v13 = vmul.f32 %v2197_v52, %v1635_v4  ;;  %v1640_v35 = vld [vmem:[#allocation3 + $0x30] sm:$0xff] }
 0x2b5   : > { %v1477_v46 = vpop.f32.mrf.mxu1  ;;  %v2201_v49 = vpop.eup %2200  ;;  %2228 = vpow2.f32 %v1978_v41  ;;  %v1604_v15 = vadd.f32 1.0, %v2199_v47 }
 0x2b6   : > { %v1478_v51 = vadd.f32 %v1477_v46, %v1317_v37  ;;  %v2203_v57 = vpop.eup %2202  ;;  %2230 = vtanh.f32 %v1474_v45  ;;  %v1644_v20 = vmul.f32 %v2201_v49, %v1636_v10 }
 0x2b7   : > { %v1479_v56 = vpop.f32.mrf.mxu1  ;;  %v2205_v59 = vpop.eup %2204  ;;  %2232 = vrcp.f32 %v1561_v48  ;;  %v1605_v23 = vadd.f32 1.0, %v2203_v57 }
 0x2b8   : > { %v1480_v61 = vadd.f32 %v1479_v56, %v1319_v50  ;;  %v2207_v62 = vpop.eup %2206  ;;  %2234 = vtanh.f32 %v1478_v51  ;;  %v1645_v27 = vmul.f32 %v2205_v59, %v1637_v18 }
 0x2b9   : > { %v2209_v1 = vpop.eup %2208  ;;  %2236 = vrcp.f32 %v1513_v58  ;;  %v1606_v30 = vadd.f32 1.0, %v2207_v62 }
 0x2ba   : > { %v2211_v2 = vpop.eup %2210  ;;  %2238 = vtanh.f32 %v1480_v61  ;;  %v1646_v32 = vmul.f32 %v2209_v1, %v1638_v24 }
 0x2bb   : > { %v2213_v5 = vpop.eup %2212  ;;  %v1650_v7 = vmul.f32 %v2211_v2, %v3208_v44  ;;  %2240 = vrcp.f32 %v1602_v3 }
 0x2bc   : > { %v2215_v36 = vpop.eup %2214  ;;  %v1607_v34 = vadd.f32 1.0, %v2213_v5 }
 0x2bd   : > { %v2217_v11 = vpop.eup %2216  ;;  %v1658_v12 = vadd.f32 %v1650_v7, %v1642_v6  ;;  %v1651_v53 = vmul.f32 %v2215_v36, %v3210_v55 }
 0x2be   : > { %v2219_v14 = vpop.eup %2218  ;;  %v1647_v38 = vmul.f32 %v2217_v11, %v1639_v60 }
 0x2bf   : > { %v2221_v19 = vpop.eup %2220  ;;  %2242 = vtanh.f32 %v1658_v12  ;;  %1682 = vst [vmem:[#allocation3] sm:$0xff] %v1658_v12  ;;  %1706 = vst [vmem:[%s2883_s8] sm:$0xff] %v1658_v12  ;;  %v1659_v44 = vadd.f32 %v1651_v53, %v1643_v13  ;;  %v1652_v21 = vmul.f32 %v2219_v14, %v3214_v63 }
 0x2c0   : > { %v2223_v22 = vpop.eup %2222  ;;  %2244 = vrcp.f32 %v1603_v8  ;;  %v1608_v41 = vadd.f32 1.0, %v2221_v19 }
 0x2c1   : > { %v2225_v26 = vpop.eup %2224  ;;  %2246 = vtanh.f32 %v1659_v44  ;;  %1683 = vst [vmem:[#allocation3 + $0x18] sm:$0xff] %v1659_v44  ;;  %1707 = vst [vmem:[%s2883_s8 + $0x8] sm:$0xff] %v1659_v44  ;;  %v1660_v55 = vadd.f32 %v1652_v21, %v1644_v20  ;;  %v1653_v28 = vmul.f32 %v2223_v22, %v3217_v9 }
 0x2c2   : > { %v2227_v29 = vpop.eup %2226  ;;  %2248 = vrcp.f32 %v1604_v15  ;;  %v1648_v52 = vmul.f32 %v2225_v26, %v1640_v35 }
 0x2c3   : > { %v2229_v31 = vpop.eup %2228  ;;  %2250 = vtanh.f32 %v1660_v55  ;;  %1684 = vst [vmem:[#allocation3 + $0x10] sm:$0xff] %v1660_v55  ;;  %1708 = vst [vmem:[%s2883_s8 + $0x10] sm:$0xff] %v1660_v55  ;;  %v1661_v63 = vadd.f32 %v1653_v28, %v1645_v27  ;;  %v1654_v17 = vmul.f32 %v2227_v29, %v3221_v54  ;;  %v1641_v54 = vld [vmem:[#allocation3 + $0x38] sm:$0xff] }
 0x2c4   : > { %v2231_v33 = vpop.eup %2230  ;;  %2252 = vrcp.f32 %v1605_v23  ;;  %v1609_v47 = vadd.f32 1.0, %v2229_v31 }
 0x2c5   : > { %v2233_v37 = vpop.eup %2232  ;;  %2254 = vtanh.f32 %v1661_v63  ;;  %1685 = vst [vmem:[#allocation3 + $0x20] sm:$0xff] %v1661_v63  ;;  %1709 = vst [vmem:[%s2883_s8 + $0x18] sm:$0xff] %v1661_v63  ;;  %v1662_v9 = vadd.f32 %v1654_v17, %v1646_v32  ;;  %v1655_v39 = vmul.f32 %v2231_v33, %v3223_v16 }
 0x2c6   : > { %v2235_v40 = vpop.eup %2234  ;;  %2256 = vrcp.f32 %v1606_v30  ;;  %v1649_v48 = vmul.f32 %v2233_v37, %v1641_v54 }
 0x2c7   : > { %v2237_v42 = vpop.eup %2236  ;;  %2258 = vtanh.f32 %v1662_v9  ;;  %1686 = vst [vmem:[#allocation3 + $0x28] sm:$0xff] %v1662_v9  ;;  %1710 = vst [vmem:[%s2883_s8 + $0x20] sm:$0xff] %v1662_v9  ;;  %v1663_v43 = vadd.f32 %v1655_v39, %v1647_v38  ;;  %v1656_v45 = vmul.f32 %v2235_v40, %v3226_v25 }
 0x2c8   : > { %v2239_v46 = vpop.eup %2238  ;;  %2260 = vrcp.f32 %v1607_v34 }
 0x2c9   : > { %2262 = vtanh.f32 %v1663_v43  ;;  %1687 = vst [vmem:[#allocation3 + $0x8] sm:$0xff] %v1663_v43  ;;  %1711 = vst [vmem:[%s2883_s8 + $0x28] sm:$0xff] %v1663_v43  ;;  %v1664_v16 = vadd.f32 %v1656_v45, %v1648_v52  ;;  %v1657_v49 = vmul.f32 %v2239_v46, %v2237_v42  ;;  %v2241_v50 = vpop.eup %2240 }
 0x2ca   : > { %2264 = vrcp.f32 %v1608_v41 }
 0x2cb   : > { %2266 = vtanh.f32 %v1664_v16  ;;  %1688 = vst [vmem:[#allocation3 + $0x30] sm:$0xff] %v1664_v16  ;;  %1712 = vst [vmem:[%s2883_s8 + $0x30] sm:$0xff] %v1664_v16  ;;  %v1665_v25 = vadd.f32 %v1657_v49, %v1649_v48 }
 0x2cc   : > { %v2243_v51 = vpop.eup %2242  ;;  %2268 = vrcp.f32 %v1609_v47 }
 0x2cd   : > { %v2245_v56 = vpop.eup %2244  ;;  %v1674_v57 = vmul.f32 %v2243_v51, %v2241_v50  ;;  %2270 = vtanh.f32 %v1665_v25  ;;  %1689 = vst [vmem:[#allocation3 + $0x38] sm:$0xff] %v1665_v25  ;;  %1713 = vst [vmem:[%s2883_s8 + $0x38] sm:$0xff] %v1665_v25 }
 0x2ce   : > { %v2247_v58 = vpop.eup %2246 }
 0x2cf   : > { %2421 = shalt.err (!%p2418_p6)
}
 0x2d0   : > { %s2422_s8 = scalar_lea.hbm %s3253_s2, 1024  ;;  %s2426_s29 = scalar_lea.hbm %s3440_s20, 2048 }
 0x2d1   : > { %p2423_p10 = scmp.ne.s32.totalorder %s3253_s2, %s2422_s8  ;;  %p2427_p4 = scmp.lt.s32.totalorder %s3253_s2, %s3440_s20 }
 0x2d2   : > { %p2428_p9 = scmp.lt.s32.totalorder %s2426_s29, %s2422_s8 }
 0x2d3   : > { %p2424_p8 = pnand %p2423_p10, %p2736_p2 }
 0x2d4   : > { %p2429_p3 = por %p2428_p9, %p2427_p4 }
 0x2d5   : > { %p2425_p12 = pneg %p2424_p8 }
 0x2d7   : > { %p2430_p0 = pnand %p2429_p3, %p2425_p12 }
 0x2d9   : > { %2433 = shalt.err (!%p2430_p0)
}
 0x2da   : > { %s2588_s13 = smov 256   ;;  %v2249_v59 = vpop.eup %2248  ;;  %1690 = vst [vmem:[#allocation2 + $0x30] sm:$0xff] %v1674_v57  ;;  %1698 = vst [vmem:[%s2881_s27] sm:$0xff] %v1674_v57  ;;  %v1675_v61 = vmul.f32 %v2247_v58, %v2245_v56  ;;  %s1715_s6 = scalar_lea.sflag [#allocation7], %s2870_s12 }
 0x2db   : > { %2006 = dma.vmem_to_hbm [thread:$0]  (%p2736_p2), %s3255_s1, 1024, %s3253_s2, %s1720_s4, %s2588_s13, %s2588_s13, %s2580_s18   ;;  %v2251_v62 = vpop.eup %2250 }
 0x2dc   : > { %v2253_v0 = vpop.eup %2252  ;;  %1691 = vst [vmem:[#allocation2] sm:$0xff] %v1675_v61  ;;  %1699 = vst [vmem:[%s2881_s27 + $0x8] sm:$0xff] %v1675_v61  ;;  %v1676_v1 = vmul.f32 %v2251_v62, %v2249_v59  ;;  %s1733_s1 = sshll.u32 %s2881_s27, 4  ;;  %s3441_s4 = sld [smem:[#allocation37_spill]]  ;;  %s3299_s1 = int_to_ptr.vmem [resolvable:$true] %s1733_s1 }
 0x2dd   : > { %v2255_v2 = vpop.eup %2254  ;;  %s2434_s17 = scalar_lea.vmem %s3299_s1, 1024  ;;  %s2589_s16 = smov [#allocation14]  }
 0x2de   : > { %v2257_v3 = vpop.eup %2256  ;;  %1692 = vst [vmem:[#allocation2 + $0x18] sm:$0xff] %v1676_v1  ;;  %1700 = vst [vmem:[%s2881_s27 + $0x10] sm:$0xff] %v1676_v1  ;;  %v1677_v4 = vmul.f32 %v2255_v2, %v2253_v0  ;;  %p2435_p7 = scmp.ne.s32.totalorder %s3299_s1, %s2434_s17  ;;  %s2438_s19 = sshll.u32 %s2589_s16, 4  ;;  %s2439_s19 = int_to_ptr.vmem [resolvable:$false] %s2438_s19 }
 0x2df   : > { %v2259_v5 = vpop.eup %2258  ;;  %s2440_s8 = scalar_lea.vmem %s2439_s19, 2048  ;;  %p2441_p5 = scmp.lt.s32.totalorder %s3299_s1, %s2439_s19 }
 0x2e0   : > { %v2261_v6 = vpop.eup %2260  ;;  %1693 = vst [vmem:[#allocation2 + $0x10] sm:$0xff] %v1677_v4  ;;  %1701 = vst [vmem:[%s2881_s27 + $0x18] sm:$0xff] %v1677_v4  ;;  %v1678_v7 = vmul.f32 %v2259_v5, %v2257_v3  ;;  %p2436_p13 = pnand %p2435_p7, %p2736_p2  ;;  %p2442_p11 = scmp.lt.s32.totalorder %s2440_s8, %s2434_s17 }
 0x2e1   : > { %v2263_v36 = vpop.eup %2262 }
 0x2e2   : > { %v2265_v8 = vpop.eup %2264  ;;  %1694 = vst [vmem:[#allocation2 + $0x8] sm:$0xff] %v1678_v7  ;;  %1702 = vst [vmem:[%s2881_s27 + $0x20] sm:$0xff] %v1678_v7  ;;  %v1679_v10 = vmul.f32 %v2263_v36, %v2261_v6  ;;  %s3297_s5 = scalar_lea.hbm %s3441_s4, %s1989_s9  ;;  %p2437_p1 = pneg %p2436_p13 }
 0x2e3   : > { %v2267_v11 = vpop.eup %2266  ;;  %p2443_p6 = por %p2442_p11, %p2441_p5 }
 0x2e4   : > { %v2269_v12 = vpop.eup %2268  ;;  %1695 = vst [vmem:[#allocation2 + $0x20] sm:$0xff] %v1679_v10  ;;  %1703 = vst [vmem:[%s2881_s27 + $0x28] sm:$0xff] %v1679_v10  ;;  %v1680_v13 = vmul.f32 %v2267_v11, %v2265_v8 }
 0x2e5   : > { %v2271_v53 = vpop.eup %2270  ;;  %p2444_p10 = pnand %p2443_p6, %p2437_p1 }
 0x2e6   : > { %1696 = vst [vmem:[#allocation2 + $0x28] sm:$0xff] %v1680_v13  ;;  %1704 = vst [vmem:[%s2881_s27 + $0x30] sm:$0xff] %v1680_v13  ;;  %v1681_v14 = vmul.f32 %v2271_v53, %v2269_v12 }
 0x2e8   : > { %1697 = vst [vmem:[#allocation2 + $0x38] sm:$0xff] %v1681_v14  ;;  %1705 = vst [vmem:[%s2881_s27 + $0x38] sm:$0xff] %v1681_v14 }
 0x2e9   : > { %2447 = shalt.err (!%p2444_p10)
}
 0x2ea   : > { %s2448_s27 = scalar_lea.hbm %s3297_s5, 1024  ;;  %s2452_s24 = scalar_lea.hbm %s3441_s4, 2048 }
 0x2eb   : > { %p2449_p8 = scmp.ne.s32.totalorder %s3297_s5, %s2448_s27  ;;  %p2453_p9 = scmp.lt.s32.totalorder %s3297_s5, %s3441_s4 }
 0x2ec   : > { %p2454_p3 = scmp.lt.s32.totalorder %s2452_s24, %s2448_s27 }
 0x2ed   : > { %p2450_p12 = pnand %p2449_p8, %p2736_p2 }
 0x2ee   : > { %p2455_p0 = por %p2454_p3, %p2453_p9 }
 0x2ef   : > { %p2451_p4 = pneg %p2450_p12 }
 0x2f1   : > { %p2456_p7 = pnand %p2455_p0, %p2451_p4 }
 0x2f3   : > { %2459 = shalt.err (!%p2456_p7)
}
 0x2f4   : > { %2005 = dma.vmem_to_hbm [thread:$0]  (%p2736_p2), %s3299_s1, 1024, %s3297_s5, %s1715_s6, %s2588_s13, %s2588_s13, %s2580_s18  }
 0x2f5 PF: > { %s3442_s10 = sld [smem:[#allocation22_spill]]  ;;  %p2038_p13 = scmp.ge.s32.totalorder %s2566_s7, 2 }
 0x2f6   : > { %s3443_s21 = sld [smem:[#allocation30_spill]] }
 0x2fb   : > { %s1764_s14 = sand.u32 1, %s3442_s10  }
 0x2fc   : > { %p3444_p1 = scmp.ne.s32.totalorder %s3443_s21, 0  ;;  %s1765_s2 = scalar_lea.sflag [#allocation7], %s1764_s14 }
 0x2fe   : > { %p2027_p5 = pnand %p2038_p13, %p3444_p1 }
 0x300   : > { %p2028_p11 = pneg %p2027_p5 }
 0x302   : > { %2517 = dma.done.wait (%p2028_p11), %s1765_s2, 1024  }
 0x303   : > { %2519 = vsyncadd (%p2028_p11), %s1765_s2, 4294966272  ;;  %s1774_s17 = scalar_lea.sflag [#allocation16], %s1764_s14 }
 0x304   : > { %2521 = dma.done.wait (%p2028_p11), %s1774_s17, 1024  }
 0x305   : > { %2523 = vsyncadd (%p2028_p11), %s1774_s17, 4294966272  ;;  %s30_s7 = sadd.s32 1, %s2566_s7   ;;  %s3445_s21 = sld [smem:[#allocation23_spill]] }
 0x306   : > { %p27_p6 = scmp.ge.s32.totalorder %s30_s7, 18   ;;  %s3446_s18 = smov %s2821_s22 }
 0x307   : > { %s3447_s27 = sld [smem:[#allocation26_spill]]  ;;  %s3449_s22 = smov %s2534_s23 }
 0x308   : > { %s3448_s29 = sld [smem:[#allocation32_spill]]  ;;  %s3450_s23 = smov %s2818_s11 }
 0x309   : > { %s3451_s24 = smov %s2542_s25  ;;  %s3452_s25 = smov %s2546_s26 }
 0x30a   : > { %s3453_s26 = smov %s3446_s18  ;;  %s3454_s28 = smov %s2562_s30 }
 0x30b   : > { %s3455_s30 = smov %s3461_s15  ;;  %29 = sbr.rel (!%p27_p6) target bundleno = 21 (0x15), region = 145 }
 0x310   :  { %1779 = vsyncpa [#allocation6], 1 }
 0x311   :  { %1781 = vsyncpa [#allocation6 + $0x1], 1 }
 0x312   :  { %1782 = vsyncpa [#allocation9], 1 }
 0x313   :  { %1783 = vsyncpa [#allocation12], 1 }
 0x314   :  { %1785 = vsyncpa [#allocation12 + $0x1], 1 }
 0x315   :  { %1786 = vsyncpa [#allocation7], 1 }
 0x316   :  { %1788 = vsyncpa [#allocation7 + $0x1], 1 }
 0x317   :  { %1789 = vsyncpa [#allocation16], 1 }
 0x318   :  { %1791 = vsyncpa [#allocation16 + $0x1], 1 }

</bundles_post_ra>
